<compile_context>
chip_gen: v7x
topology: tpu7x:2x2x1
jax: 0.10.0
libtpu: 0.0.40
codegen_flags: <defaults>
</compile_context>

<pallas_src>
import functools

import jax
import jax.numpy as jnp
from jax import lax
from jax.experimental import pallas as pl
from jax.experimental.pallas import tpu as pltpu


def _round_up(x, m):
    return (x + m - 1) // m * m


def _pruned_conv_kernel(x_ref, w_ref, m_ref, b_ref, o_ref, *,
                        kh, kw, stride, dilation, groups, h_tile, w_out,
                        cin_g_pad, cout_g_pad):
    """One (batch, H_out-tile) block per grid step.

    x_ref: (strip_rows, Wp, groups*cin_g_pad)   halo-inclusive input row strip
    w_ref: (groups, kh*kw*cin_g_pad, cout_g_pad) reshaped weight
    m_ref: same shape as w_ref                   pruning mask
    b_ref: (1, groups*cout_g_pad)                bias (zero-padded)
    o_ref: (h_tile, w_out, groups*cout_g_pad)
    """
    bias = b_ref[...]                                   # (1, G*cout_g_pad)
    span_h = (h_tile - 1) * stride + 1
    span_w = (w_out - 1) * stride + 1

    for g in range(groups):
        # Pruning (weight * mask) done on-chip, matching the torch forward.
        wg = w_ref[g] * m_ref[g]                        # (K, cout_g_pad)

        # Build im2col patch matrix: K = kh*kw*cin_g_pad, ordered (ih, iw, ci)
        # to match the weight reshape done in the wrapper.
        cols = []
        for ih in range(kh):
            for iw in range(kw):
                h0 = ih * dilation
                w0 = iw * dilation
                patch = x_ref[pl.ds(h0, span_h),
                              pl.ds(w0, span_w),
                              pl.ds(g * cin_g_pad, cin_g_pad)]
                if stride > 1:
                    # TODO(synk): for stride>1/dilation>1 a space-to-depth
                    # pre-layout in the wrapper would avoid this strided slice.
                    patch = lax.slice(patch, (0, 0, 0), patch.shape,
                                      (stride, stride, 1))
                cols.append(patch.reshape(h_tile * w_out, cin_g_pad))
        patch_mat = jnp.concatenate(cols, axis=1)       # (HW, K)

        # Single large-K MXU matmul per group, f32 accumulation.
        out_g = jnp.dot(patch_mat, wg, preferred_element_type=jnp.float32)
        out_g = out_g + bias[:, g * cout_g_pad:(g + 1) * cout_g_pad]

        o_ref[:, :, g * cout_g_pad:(g + 1) * cout_g_pad] = (
            out_g.reshape(h_tile, w_out, cout_g_pad).astype(o_ref.dtype))


def pruned_conv2d(x_nchw, weight_oihw, mask_oihw, bias, *,
                  stride=1, padding=0, dilation=1, groups=1, h_tile=8):
    """Equivalent of PrunedConv2d.forward.  x: (N, C_in, H, W) float32."""
    n, c_in, h, w = x_nchw.shape
    c_out, cin_g, kh, kw = weight_oihw.shape
    assert cin_g * groups == c_in
    cout_g = c_out // groups

    h_out = (h + 2 * padding - dilation * (kh - 1) - 1) // stride + 1
    w_out = (w + 2 * padding - dilation * (kw - 1) - 1) // stride + 1

    # Lane-dense per-group channel padding (multiples of 128).
    cin_g_pad = _round_up(cin_g, 128)
    cout_g_pad = _round_up(cout_g, 128)
    cin_pad = groups * cin_g_pad
    cout_pad = groups * cout_g_pad

    # Spatial (output-row) tiling.  h_tile can be tuned per generation
    # (smaller for v7x's 64 MiB VMEM / v5e's 16 MiB scoped default).
    h_tile = max(1, min(h_tile, h_out))
    n_ht = pl.cdiv(h_out, h_tile)
    h_out_pad = n_ht * h_tile
    strip_rows = (h_tile - 1) * stride + (kh - 1) * dilation + 1
    rows_needed = (h_out_pad - 1) * stride + (kh - 1) * dilation + 1
    wp = w + 2 * padding

    # ---- layout plumbing (plain JAX): NCHW->NHWC, spatial pad, channel pad.
    x = jnp.transpose(x_nchw, (0, 2, 3, 1)).astype(jnp.float32)
    extra_h = max(0, rows_needed - (h + 2 * padding))
    x = jnp.pad(x, ((0, 0), (padding, padding + extra_h),
                    (padding, padding), (0, 0)))
    x = x.reshape(n, x.shape[1], wp, groups, cin_g)
    x = jnp.pad(x, ((0, 0), (0, 0), (0, 0), (0, 0), (0, cin_g_pad - cin_g)))
    x = x.reshape(n, x.shape[1], wp, cin_pad)

    # Pre-gather halo-inclusive row strips so every grid step is a small,
    # non-overlapping rectangular block (expressible with plain BlockSpecs).
    row_idx = (jnp.arange(n_ht)[:, None] * (h_tile * stride)
               + jnp.arange(strip_rows)[None, :])
    x_strips = x[:, row_idx]                # (n, n_ht, strip_rows, wp, cin_pad)

    # Weight / mask: OIHW -> (groups, kh*kw*cin_g_pad, cout_g_pad).
    def prep_w(t_oihw):
        t = jnp.transpose(t_oihw, (2, 3, 1, 0)).astype(jnp.float32)  # HWIO
        t = t.reshape(kh, kw, cin_g, groups, cout_g)
        t = jnp.pad(t, ((0, 0), (0, 0), (0, cin_g_pad - cin_g),
                        (0, 0), (0, cout_g_pad - cout_g)))
        t = jnp.transpose(t, (3, 0, 1, 2, 4))
        return t.reshape(groups, kh * kw * cin_g_pad, cout_g_pad)

    w_r = prep_w(weight_oihw)
    m_r = prep_w(mask_oihw)

    b = bias if bias is not None else jnp.zeros((c_out,), jnp.float32)
    b = b.astype(jnp.float32).reshape(groups, cout_g)
    b = jnp.pad(b, ((0, 0), (0, cout_g_pad - cout_g))).reshape(1, cout_pad)

    K = kh * kw * cin_g_pad
    kernel = functools.partial(
        _pruned_conv_kernel,
        kh=kh, kw=kw, stride=stride, dilation=dilation, groups=groups,
        h_tile=h_tile, w_out=w_out,
        cin_g_pad=cin_g_pad, cout_g_pad=cout_g_pad)

    flops = 2 * n * h_out * w_out * kh * kw * cin_g * c_out
    bytes_accessed = 4 * (x_strips.size + w_r.size + m_r.size + b.size
                          + n * h_out_pad * w_out * cout_pad)

    out = pl.pallas_call(
        kernel,
        out_shape=jax.ShapeDtypeStruct((n, h_out_pad, w_out, cout_pad),
                                       jnp.float32),
        grid_spec=pltpu.PrefetchScalarGridSpec(
            num_scalar_prefetch=0,
            grid=(n, n_ht),
            in_specs=[
                pl.BlockSpec((None, None, strip_rows, wp, cin_pad),
                             lambda b_, t: (b_, t, 0, 0, 0)),
                pl.BlockSpec((groups, K, cout_g_pad),
                             lambda b_, t: (0, 0, 0)),
                pl.BlockSpec((groups, K, cout_g_pad),
                             lambda b_, t: (0, 0, 0)),
                pl.BlockSpec((1, cout_pad), lambda b_, t: (0, 0)),
            ],
            out_specs=pl.BlockSpec((None, h_tile, w_out, cout_pad),
                                   lambda b_, t: (b_, t, 0, 0)),
        ),
        compiler_params=pltpu.CompilerParams(
            dimension_semantics=("parallel", "parallel"),
            vmem_limit_bytes=32 * 1024 * 1024),
        cost_estimate=pl.CostEstimate(flops=flops, transcendentals=0,
                                      bytes_accessed=bytes_accessed),
    )(x_strips, w_r, m_r, b)

    # Drop spatial / channel padding, NHWC -> NCHW.
    out = out[:, :h_out]
    out = out.reshape(n, h_out, w_out, groups, cout_g_pad)[..., :cout_g]
    out = out.reshape(n, h_out, w_out, c_out)
    return jnp.transpose(out, (0, 3, 1, 2))


if __name__ == "__main__":
    # Module config (PrunedConv2d.__init__ semantics).
    in_channels, out_channels, kernel_size = 4, 8, 3
    stride, padding, dilation, groups, use_bias = 1, 1, 1, 1, True

    key = jax.random.PRNGKey(0)
    kx, kw_, kb = jax.random.split(key, 3)

    x = jax.random.normal(kx, (2, in_channels, 16, 16), jnp.float32)
    weight = jax.random.normal(
        kw_, (out_channels, in_channels // groups, kernel_size, kernel_size),
        jnp.float32)
    bias = jax.random.normal(kb, (out_channels,), jnp.float32)

    # Deterministic synthetic pruning mask (register_buffer 'mask'): keep every
    # other weight element.
    mask = (jnp.arange(weight.size).reshape(weight.shape) % 2 == 0
            ).astype(jnp.float32)

    out = pruned_conv2d(x, weight, mask, bias,
                        stride=stride, padding=padding,
                        dilation=dilation, groups=groups)
    out = jax.block_until_ready(out)

    # Silent correctness check against XLA's conv (same semantics as F.conv2d).
    ref = lax.conv_general_dilated(
        x, weight * mask,
        window_strides=(stride, stride),
        padding=((padding, padding), (padding, padding)),
        rhs_dilation=(dilation, dilation),
        dimension_numbers=("NCHW", "OIHW", "NCHW"),
        feature_group_count=groups) + bias[None, :, None, None]
    assert out.shape == ref.shape
    assert jnp.allclose(out, ref, atol=1e-4, rtol=1e-4)

    print("KERNEL_OK")
</pallas_src>

<mosaic_0001>
module attributes {stable_mosaic.version = 11 : i64} {
  func.func @_pruned_conv_kernel(%arg0: i32, %arg1: i32, %arg2: memref<1x1x10x18x128xf32, #tpu.memory_space<vmem>>, %arg3: memref<1x1152x128xf32, #tpu.memory_space<vmem>>, %arg4: memref<1x1152x128xf32, #tpu.memory_space<vmem>>, %arg5: memref<1x128xf32, #tpu.memory_space<vmem>>, %arg6: memref<1x8x16x128xf32, #tpu.memory_space<vmem>>) attributes {dimension_semantics = [#tpu.dimension_semantics<parallel>, #tpu.dimension_semantics<parallel>], iteration_bounds = array<i64: 2, 2>, scalar_prefetch = 0 : i64, scratch_operands = 0 : i64, tpu.core_type = #tpu.core_type<tc>, window_params = [{transform_indices = @transform_0, window_bounds = array<i64: 1, 1, 10, 18, 128>}, {pipeline_mode = #tpu.pipeline_mode<synchronous>, transform_indices = @transform_1, window_bounds = array<i64: 1, 1152, 128>}, {pipeline_mode = #tpu.pipeline_mode<synchronous>, transform_indices = @transform_2, window_bounds = array<i64: 1, 1152, 128>}, {pipeline_mode = #tpu.pipeline_mode<synchronous>, transform_indices = @transform_3, window_bounds = array<i64: 1, 128>}, {transform_indices = @transform_4, window_bounds = array<i64: 1, 8, 16, 128>}]} {
    %c0 = arith.constant 0 : index
    %c0_0 = arith.constant 0 : index
    %0 = vector.load %arg5[%c0, %c0_0] : memref<1x128xf32, #tpu.memory_space<vmem>>, vector<1x128xf32>
    %c0_1 = arith.constant 0 : index
    %c0_2 = arith.constant 0 : index
    %c0_3 = arith.constant 0 : index
    %1 = vector.load %arg3[%c0_1, %c0_2, %c0_3] : memref<1x1152x128xf32, #tpu.memory_space<vmem>>, vector<1x1152x128xf32>
    %2 = vector.shape_cast %1 : vector<1x1152x128xf32> to vector<1152x128xf32>
    %c0_4 = arith.constant 0 : index
    %c0_5 = arith.constant 0 : index
    %c0_6 = arith.constant 0 : index
    %3 = vector.load %arg4[%c0_4, %c0_5, %c0_6] : memref<1x1152x128xf32, #tpu.memory_space<vmem>>, vector<1x1152x128xf32>
    %4 = vector.shape_cast %3 : vector<1x1152x128xf32> to vector<1152x128xf32>
    %5 = arith.mulf %2, %4 : vector<1152x128xf32>
    %c0_7 = arith.constant 0 : index
    %c0_8 = arith.constant 0 : index
    %c0_9 = arith.constant 0 : index
    %c0_10 = arith.constant 0 : index
    %c0_11 = arith.constant 0 : index
    %6 = vector.load %arg2[%c0_7, %c0_8, %c0_9, %c0_10, %c0_11] : memref<1x1x10x18x128xf32, #tpu.memory_space<vmem>>, vector<1x1x8x16x128xf32>
    %7 = vector.shape_cast %6 : vector<1x1x8x16x128xf32> to vector<8x16x128xf32>
    %8 = vector.shape_cast %7 : vector<8x16x128xf32> to vector<128x128xf32>
    %c0_12 = arith.constant 0 : index
    %c0_13 = arith.constant 0 : index
    %c0_14 = arith.constant 0 : index
    %c1 = arith.constant 1 : index
    %c0_15 = arith.constant 0 : index
    %9 = vector.load %arg2[%c0_12, %c0_13, %c0_14, %c1, %c0_15] : memref<1x1x10x18x128xf32, #tpu.memory_space<vmem>>, vector<1x1x8x16x128xf32>
    %10 = vector.shape_cast %9 : vector<1x1x8x16x128xf32> to vector<8x16x128xf32>
    %11 = vector.shape_cast %10 : vector<8x16x128xf32> to vector<128x128xf32>
    %c0_16 = arith.constant 0 : index
    %c0_17 = arith.constant 0 : index
    %c0_18 = arith.constant 0 : index
    %c2 = arith.constant 2 : index
    %c0_19 = arith.constant 0 : index
    %12 = vector.load %arg2[%c0_16, %c0_17, %c0_18, %c2, %c0_19] : memref<1x1x10x18x128xf32, #tpu.memory_space<vmem>>, vector<1x1x8x16x128xf32>
    %13 = vector.shape_cast %12 : vector<1x1x8x16x128xf32> to vector<8x16x128xf32>
    %14 = vector.shape_cast %13 : vector<8x16x128xf32> to vector<128x128xf32>
    %c0_20 = arith.constant 0 : index
    %c0_21 = arith.constant 0 : index
    %c1_22 = arith.constant 1 : index
    %c0_23 = arith.constant 0 : index
    %c0_24 = arith.constant 0 : index
    %15 = vector.load %arg2[%c0_20, %c0_21, %c1_22, %c0_23, %c0_24] : memref<1x1x10x18x128xf32, #tpu.memory_space<vmem>>, vector<1x1x8x16x128xf32>
    %16 = vector.shape_cast %15 : vector<1x1x8x16x128xf32> to vector<8x16x128xf32>
    %17 = vector.shape_cast %16 : vector<8x16x128xf32> to vector<128x128xf32>
    %c0_25 = arith.constant 0 : index
    %c0_26 = arith.constant 0 : index
    %c1_27 = arith.constant 1 : index
    %c1_28 = arith.constant 1 : index
    %c0_29 = arith.constant 0 : index
    %18 = vector.load %arg2[%c0_25, %c0_26, %c1_27, %c1_28, %c0_29] : memref<1x1x10x18x128xf32, #tpu.memory_space<vmem>>, vector<1x1x8x16x128xf32>
    %19 = vector.shape_cast %18 : vector<1x1x8x16x128xf32> to vector<8x16x128xf32>
    %20 = vector.shape_cast %19 : vector<8x16x128xf32> to vector<128x128xf32>
    %c0_30 = arith.constant 0 : index
    %c0_31 = arith.constant 0 : index
    %c1_32 = arith.constant 1 : index
    %c2_33 = arith.constant 2 : index
    %c0_34 = arith.constant 0 : index
    %21 = vector.load %arg2[%c0_30, %c0_31, %c1_32, %c2_33, %c0_34] : memref<1x1x10x18x128xf32, #tpu.memory_space<vmem>>, vector<1x1x8x16x128xf32>
    %22 = vector.shape_cast %21 : vector<1x1x8x16x128xf32> to vector<8x16x128xf32>
    %23 = vector.shape_cast %22 : vector<8x16x128xf32> to vector<128x128xf32>
    %c0_35 = arith.constant 0 : index
    %c0_36 = arith.constant 0 : index
    %c2_37 = arith.constant 2 : index
    %c0_38 = arith.constant 0 : index
    %c0_39 = arith.constant 0 : index
    %24 = vector.load %arg2[%c0_35, %c0_36, %c2_37, %c0_38, %c0_39] : memref<1x1x10x18x128xf32, #tpu.memory_space<vmem>>, vector<1x1x8x16x128xf32>
    %25 = vector.shape_cast %24 : vector<1x1x8x16x128xf32> to vector<8x16x128xf32>
    %26 = vector.shape_cast %25 : vector<8x16x128xf32> to vector<128x128xf32>
    %c0_40 = arith.constant 0 : index
    %c0_41 = arith.constant 0 : index
    %c2_42 = arith.constant 2 : index
    %c1_43 = arith.constant 1 : index
    %c0_44 = arith.constant 0 : index
    %27 = vector.load %arg2[%c0_40, %c0_41, %c2_42, %c1_43, %c0_44] : memref<1x1x10x18x128xf32, #tpu.memory_space<vmem>>, vector<1x1x8x16x128xf32>
    %28 = vector.shape_cast %27 : vector<1x1x8x16x128xf32> to vector<8x16x128xf32>
    %29 = vector.shape_cast %28 : vector<8x16x128xf32> to vector<128x128xf32>
    %c0_45 = arith.constant 0 : index
    %c0_46 = arith.constant 0 : index
    %c2_47 = arith.constant 2 : index
    %c2_48 = arith.constant 2 : index
    %c0_49 = arith.constant 0 : index
    %30 = vector.load %arg2[%c0_45, %c0_46, %c2_47, %c2_48, %c0_49] : memref<1x1x10x18x128xf32, #tpu.memory_space<vmem>>, vector<1x1x8x16x128xf32>
    %31 = vector.shape_cast %30 : vector<1x1x8x16x128xf32> to vector<8x16x128xf32>
    %32 = vector.shape_cast %31 : vector<8x16x128xf32> to vector<128x128xf32>
    %33 = tpu.concatenate %8, %11, %14, %17, %20, %23, %26, %29, %32 in 1 : vector<128x128xf32>, vector<128x128xf32>, vector<128x128xf32>, vector<128x128xf32>, vector<128x128xf32>, vector<128x128xf32>, vector<128x128xf32>, vector<128x128xf32>, vector<128x128xf32> -> vector<128x1152xf32>
    %cst = arith.constant dense<0.000000e+00> : vector<128x128xf32>
    %34 = tpu.matmul %33, %5, %cst {dimension_numbers = #tpu.dot_dimension_numbers<[1], [0], [0], [1], [0, 0, 1, 1], [], []>} : vector<128x1152xf32>, vector<1152x128xf32>, vector<128x128xf32> -> vector<128x128xf32>
    %35 = vector.broadcast %0 : vector<1x128xf32> to vector<128x128xf32>
    %36 = arith.addf %34, %35 : vector<128x128xf32>
    %37 = vector.shape_cast %36 : vector<128x128xf32> to vector<8x16x128xf32>
    %c0_50 = arith.constant 0 : index
    %c0_51 = arith.constant 0 : index
    %c0_52 = arith.constant 0 : index
    %c0_53 = arith.constant 0 : index
    %38 = vector.load %arg6[%c0_50, %c0_51, %c0_52, %c0_53] : memref<1x8x16x128xf32, #tpu.memory_space<vmem>>, vector<1x8x16x128xf32>
    %39 = vector.shape_cast %38 : vector<1x8x16x128xf32> to vector<8x16x128xf32>
    %40 = vector.shape_cast %37 : vector<8x16x128xf32> to vector<1x8x16x128xf32>
    tpu.vector_store %arg6[%c0_50, %c0_51, %c0_52, %c0_53], %40 {strides = array<i32>} : memref<1x8x16x128xf32, #tpu.memory_space<vmem>>, vector<1x8x16x128xf32>,
    return
  }
  func.func @transform_0(%arg0: i32, %arg1: i32) -> (i32, i32, i32, i32, i32) {
    %c0_i32 = arith.constant 0 : i32
    %c0_i32_0 = arith.constant 0 : i32
    %c0_i32_1 = arith.constant 0 : i32
    %c0_i32_2 = arith.constant 0 : i32
    return %arg0, %arg1, %c0_i32, %c0_i32_0, %c0_i32_1 : i32, i32, i32, i32, i32
  }
  func.func @transform_1(%arg0: i32, %arg1: i32) -> (i32, i32, i32) {
    %c0_i32 = arith.constant 0 : i32
    %c0_i32_0 = arith.constant 0 : i32
    %c0_i32_1 = arith.constant 0 : i32
    %c0_i32_2 = arith.constant 0 : i32
    return %c0_i32, %c0_i32_0, %c0_i32_1 : i32, i32, i32
  }
  func.func @transform_2(%arg0: i32, %arg1: i32) -> (i32, i32, i32) {
    %c0_i32 = arith.constant 0 : i32
    %c0_i32_0 = arith.constant 0 : i32
    %c0_i32_1 = arith.constant 0 : i32
    %c0_i32_2 = arith.constant 0 : i32
    return %c0_i32, %c0_i32_0, %c0_i32_1 : i32, i32, i32
  }
  func.func @transform_3(%arg0: i32, %arg1: i32) -> (i32, i32) {
    %c0_i32 = arith.constant 0 : i32
    %c0_i32_0 = arith.constant 0 : i32
    %c0_i32_1 = arith.constant 0 : i32
    return %c0_i32, %c0_i32_0 : i32, i32
  }
  func.func @transform_4(%arg0: i32, %arg1: i32) -> (i32, i32, i32, i32) {
    %c0_i32 = arith.constant 0 : i32
    %c0_i32_0 = arith.constant 0 : i32
    %c0_i32_1 = arith.constant 0 : i32
    return %arg0, %arg1, %c0_i32, %c0_i32_0 : i32, i32, i32, i32
  }
}

</mosaic_0001>

<bundles_post_ra>
// kernel: tpu_custom_call.1
= control target key start
LH: loop header
LB: loop body
LE: loop exit
PB: predicated region body
PF: predicated region fallthrough
CT: control target
= control target key end

     0   :  { %9 = vsyncpa [#allocation3], 0  ;;  %s3646_s0 = inlined_call_operand.vmem [shape: f32[2,2,10,18,128], index: 0, kind: input, shape index: {}]   ;;  %s3647_s1 = inlined_call_operand.vmem [shape: f32[1,1152,128], index: 1, kind: input, shape index: {}]   ;;  %s3648_s2 = inlined_call_operand.hbm [shape: f32[1,1152,128], index: 2, kind: input, shape index: {}]   ;;  %s3649_s3 = inlined_call_operand.vmem [shape: f32[1,128], index: 3, kind: input, shape index: {}]   ;;  %s3650_s4 = inlined_call_operand.hbm [shape: f32[2,16,16,128], index: 4, kind: output, shape index: {}]  }
   0x1   :  { %10 = vsyncpa [#allocation4], 0 }
   0x2   :  { %12 = vsyncpa [#allocation4 + $0x1], 0  ;;  %s2625_s15 = smov 0   ;;  %s2627_s16 = smov 0  }
   0x3   :  { %s2629_s17 = smov 0   ;;  %s2631_s18 = smov 0  }
   0x4   :  { %s2633_s19 = smov 0   ;;  %s2635_s20 = smov 0  }
   0x5   :  { %s2637_s21 = smov 0   ;;  %s2639_s22 = smov 0  }
   0x6 LB: > { %s1680_s23 = sadd.s32 4294967295, %s2592_s22   ;;  %s1681_s24 = sadd.s32 4294967294, %s2592_s22   ;;  %s2592_s22 = sphi %s2639_s22, %s18_s22   ;;  %s2588_s21 = sphi %s2637_s21, %s3670_s21   ;;  %s2584_s20 = sphi %s2635_s20, %s3669_s20   ;;  %s2580_s19 = sphi %s2633_s19, %s3668_s19   ;;  %s2576_s18 = sphi %s2631_s18, %s3667_s18   ;;  %s2572_s17 = sphi %s2629_s17, %s3666_s17   ;;  %s2568_s16 = sphi %s2627_s16, %s3665_s16   ;;  %s2564_s15 = sphi %s2625_s15, %s3664_s15  }
   0x7   : > { %s27_s25 = sadd.s32 1, %s2584_s20  ;;  %s30_s26 = sadd.s32 1, %s2588_s21 }
   0x8   : > { %p28_p0 = scmp.ge.s32.totalorder %s27_s25, 2  ;;  %s130_s27 = sadd.s32 1, %s2572_s17 }
   0x9   : > { %p140_p1 = scmp.ne.s32.totalorder %s2572_s17, %s2568_s16  ;;  %p141_p2 = scmp.eq.s32.totalorder %s1680_s23, 3 }
   0xa   : > { %s3672_s25 = smov (%p28_p0, %s27_s25), 0  ;;  %s3674_s26 = smov (!%p28_p0, %s30_s26), %s2588_s21 }
   0xb   : > { %s126_s28 = ssub.s32 %s2584_s20, %s3672_s25  ;;  %p2677_p3 = por %p141_p2, %p140_p1 }
   0xc   : > { %p32_p4 = scmp.ge.s32.totalorder %s3674_s26, 2  ;;  %p146_p5 = scmp.ne.s32.totalorder %s2568_s16, %s2564_s15 }
   0xd   : > { %s3655_s29 = scalar_select %p2677_p3, 1, 0 }
   0xe   : > { %p147_p6 = scmp.eq.s32.totalorder %s1681_s24, 3  ;;  %p1682_p7 = scmp.ge.s32.totalorder %s2592_s22, 1 }
   0xf   : > { %s3676_s26 = smov (%p32_p4, %s3674_s26), 0  ;;  %p154_p9 = scmp.lt.s32.totalorder %s2592_s22, 5 }
  0x10   : > { %p2686_p8 = por %p147_p6, %p146_p5  ;;  %s125_s5 = ssub.s32 %s2588_s21, %s3676_s26 }
  0x11   : > { %s127_s6 = sor.u32 %s126_s28, %s125_s5  ;;  %p2693_p10 = pnand %p1682_p7, %p154_p9 }
  0x12   : > { %s3656_s30 = scalar_select %p2686_p8, 1, 0 }
  0x13   : > { %s3657_s7 = scalar_select %p2693_p10, 1, 0 }
  0x14   : > { %p128_p11 = scmp.eq.s32.totalorder %s127_s6, 0  ;;  %p2697_p12 = scmp.eq.s32.totalorder %s1680_s23, 0 }
  0x15   : > { %p2386_p13 = pneg %p2693_p10  ;;  %s2594_s10 = smov [#allocation2]  }
  0x16   : > { %s3658_s8 = scalar_select %p2697_p12, 1, 0 }
  0x17   : > { %s2704_s9 = scalar_select %p128_p11, %s2572_s17, %s130_s27  }
  0x18   : > { %s169_s11 = sshll.u32 %s2594_s10, 4  ;;  %p2708_p0 = pnand %p2697_p12, %p2386_p13  ;;  %s170_s11 = int_to_ptr.vmem [resolvable:$true] %s169_s11 }
  0x19   : > { %s2466_s23 = scalar_lea.hbm %s3648_s2, 18432 }
  0x1a   : > { %p2467_p1 = scmp.ne.s32.totalorder %s3648_s2, %s2466_s23  ;;  %p2468_p2 = pneg %p2708_p0 }
  0x1b   : > { %p2473_p6 = scmp.lt.u32.totalorder %s2466_s23, %s3648_s2 }
  0x1c   : > { %p2469_p4 = pnand %p2468_p2, %p2467_p1 }
  0x1e   : > { %p2470_p5 = pneg %p2469_p4 }
  0x20   : > { %p2475_p7 = pnand %p2473_p6, %p2470_p5 }
  0x22   : > { %2478 = shalt.err (!%p2475_p7)
}
  0x23   : > { %s2479_s6 = scalar_lea.vmem %s170_s11, 18432  ;;  %p2487_p8 = scmp.lt.s32.totalorder %s170_s11, %s170_s11 }
  0x24   : > { %p2480_p9 = scmp.ne.s32.totalorder %s170_s11, %s2479_s6  ;;  %p2488_p3 = scmp.lt.s32.totalorder %s2479_s6, %s2479_s6 }
  0x26   : > { %p2482_p11 = pnand %p2480_p9, %p2468_p2  ;;  %p2489_p12 = por %p2488_p3, %p2487_p8 }
  0x28   : > { %p2483_p13 = pneg %p2482_p11 }
  0x2a   : > { %p2490_p10 = pnand %p2489_p12, %p2483_p13 }
  0x2c   : > { %2493 = shalt.err (!%p2490_p10)
}
  0x2d   : > { %s2595_s10 = smov 128   ;;  %s2596_s13 = smov 8  }
  0x2e   : > { %2389 = dma.hbm_to_vmem [thread:$0]  (!%p2708_p0), %s3648_s2, 18432, %s170_s11, [#allocation3], %s2595_s10, %s2595_s10, %s2596_s13  }
  0x2f   : > { %p3660_p1 = scmp.ne.s32.totalorder %s3657_s7, 0 }
  0x30   : > { %p3661_p4 = scmp.ne.s32.totalorder (!%p3660_p1), %s3658_s8, 0 }
  0x31   : > { %200 = sbr.rel (%p3660_p1) target bundleno = 480 (0x1e0), region = 36 }
  0x38   : > { %2555 = dma.done.wait (%p3661_p4), [#allocation3], 18432  }
  0x39   : > { %2557 = vsyncadd (%p3661_p4), [#allocation3], 4294948864  ;;  %v257_v0 = vld [vmem:[%s3647_s1 + $0x80] sm:$0xff]  ;;  %v258_v1 = vld [vmem:[%s3647_s1 + $0x88] sm:$0xff]  ;;  %p230_p3 = scmp.lt.s32.totalorder %s2580_s19, 1  ;;  %p232_p8 = scmp.lt.s32.totalorder %s2576_s18, 1 }
  0x3a   : > { %v401_v2 = vld [vmem:[#allocation2 + $0x80] sm:$0xff]  ;;  %v402_v3 = vld [vmem:[#allocation2 + $0x88] sm:$0xff]  ;;  %v259_v25 = vld [vmem:[%s3647_s1 + $0x90] sm:$0xff]  ;;  %s1789_s13 = sshll.u32 %s2580_s19, 5  ;;  %p3662_p12 = scmp.ne.s32.totalorder %s3655_s29, 0 }
  0x3b   : > { %v545_v4 = vmul.f32 %v401_v2, %v257_v0  ;;  %v289_v5 = vld [vmem:[%s3647_s1 + $0x180] sm:$0xff]  ;;  %v290_v6 = vld [vmem:[%s3647_s1 + $0x188] sm:$0xff]  ;;  %v546_v7 = vmul.f32 %v402_v3, %v258_v1  ;;  %v260_v26 = vld [vmem:[%s3647_s1 + $0x98] sm:$0xff]  ;;  %s2853_s14 = scalar_select %p230_p3, %s2580_s19, 1 }
  0x3c   : > { %v433_v8 = vld [vmem:[#allocation2 + $0x180] sm:$0xff]  ;;  %v434_v9 = vld [vmem:[#allocation2 + $0x188] sm:$0xff]  ;;  %v403_v29 = vld [vmem:[#allocation2 + $0x90] sm:$0xff]  ;;  %s2864_s5 = scalar_select %p232_p8, %s2576_s18, 1 }
  0x3d   : > { %v241_v10 = vld [vmem:[%s3647_s1] sm:$0xff]  ;;  %v577_v11 = vmul.f32 %v433_v8, %v289_v5  ;;  %v578_v12 = vmul.f32 %v434_v9, %v290_v6  ;;  %v242_v13 = vld [vmem:[%s3647_s1 + $0x8] sm:$0xff]  ;;  %v2202_v16 = vpack.c.bf16 %v546_v7, %v545_v4  ;;  %v404_v30 = vld [vmem:[#allocation2 + $0x98] sm:$0xff]  ;;  %v547_v32 = vmul.f32 %v403_v29, %v259_v25  ;;  %s2379_s23 = smul.u32 60, %s2853_s14  ;;  %s2597_s27 = smov [#allocation5]  }
  0x3e   : > { %v385_v14 = vld [vmem:[#allocation2] sm:$0xff]  ;;  %v386_v15 = vld [vmem:[#allocation2 + $0x8] sm:$0xff]  ;;  %v291_v31 = vld [vmem:[%s3647_s1 + $0x190] sm:$0xff]  ;;  %v548_v33 = vmul.f32 %v404_v30, %v260_v26  ;;  %s2378_s12 = smul.u32 30, %s2864_s5  ;;  %s2498_s7 = sshll.u32 %s2597_s27, 4  ;;  %s2499_s7 = int_to_ptr.vmem [resolvable:$false] %s2498_s7 }
  0x3f   : > { %v529_v17 = vmul.f32 %v385_v14, %v241_v10  ;;  %v530_v18 = vmul.f32 %v386_v15, %v242_v13  ;;  %v273_v19 = vld [vmem:[%s3647_s1 + $0x100] sm:$0xff]  ;;  %v274_v20 = vld [vmem:[%s3647_s1 + $0x108] sm:$0xff]  ;;  %v2234_v22 = vpack.c.bf16 %v578_v12, %v577_v11  ;;  %2203 = vmatprep.subr.bf16.mxu0 %v2202_v16  ;;  %v292_v34 = vld [vmem:[%s3647_s1 + $0x198] sm:$0xff] }
  0x40   : > { %v417_v21 = vld [vmem:[#allocation2 + $0x100] sm:$0xff]  ;;  %v418_v23 = vld [vmem:[#allocation2 + $0x108] sm:$0xff]  ;;  %v435_v35 = vld [vmem:[#allocation2 + $0x190] sm:$0xff]  ;;  %v2206_v43 = vpack.c.bf16 %v548_v33, %v547_v32  ;;  %s2906_s10 = sadd.s32 %s2379_s23, %s2378_s12 }
  0x41   : > { %v561_v24 = vmul.f32 %v417_v21, %v273_v19  ;;  %v2204_v27 = vpack.c.bf16 %v530_v18, %v529_v17  ;;  %v562_v28 = vmul.f32 %v418_v23, %v274_v20  ;;  %2235 = vmatprep.subr.bf16.mxu1 %v2234_v22  ;;  %v436_v36 = vld [vmem:[#allocation2 + $0x198] sm:$0xff]  ;;  %v579_v38 = vmul.f32 %v435_v35, %v291_v31  ;;  %v243_v40 = vld [vmem:[%s3647_s1 + $0x10] sm:$0xff]  ;;  %v261_v52 = vld [vmem:[%s3647_s1 + $0xa0] sm:$0xff]  ;;  %s1688_s11 = sshll.u32 %s2906_s10, 3 }
  0x42   : > { %v580_v39 = vmul.f32 %v436_v36, %v292_v34  ;;  %v244_v41 = vld [vmem:[%s3647_s1 + $0x18] sm:$0xff]  ;;  %v387_v42 = vld [vmem:[#allocation2 + $0x10] sm:$0xff]  ;;  %v262_v55 = vld [vmem:[%s3647_s1 + $0xa8] sm:$0xff]  ;;  %s2936_s12 = scalar_lea.vmem %s3646_s0, %s1688_s11  ;;  %s1793_s11 = sshll.u32 %s2576_s18, 4 }
  0x43   : > { %2205 = vmatpush3.bf16.msra.mxu0 %v2204_v27  ;;  %v2236_v37 = vpack.c.bf16 %v562_v28, %v561_v24  ;;  %v388_v44 = vld [vmem:[#allocation2 + $0x18] sm:$0xff]  ;;  %v531_v45 = vmul.f32 %v387_v42, %v243_v40  ;;  %v275_v46 = vld [vmem:[%s3647_s1 + $0x110] sm:$0xff]  ;;  %v405_v56 = vld [vmem:[#allocation2 + $0xa0] sm:$0xff]  ;;  %s1580_s5 = sadd.s32 %s1793_s11, %s1789_s13 }
  0x44   : > { %v276_v47 = vld [vmem:[%s3647_s1 + $0x118] sm:$0xff]  ;;  %v2238_v48 = vpack.c.bf16 %v580_v39, %v579_v38  ;;  %v532_v49 = vmul.f32 %v388_v44, %v244_v41  ;;  %v419_v50 = vld [vmem:[#allocation2 + $0x110] sm:$0xff]  ;;  %2207 = vmatprep.subr.bf16.mxu0 %v2206_v43  ;;  %v406_v57 = vld [vmem:[#allocation2 + $0xa8] sm:$0xff]  ;;  %v549_v59 = vmul.f32 %v405_v56, %v261_v52  ;;  %s1790_s18 = sshll.u32 %s1580_s5, 7 }
  0x45   : > { %2237 = vmatpush3.bf16.msra.mxu1 %v2236_v37  ;;  %v420_v51 = vld [vmem:[#allocation2 + $0x118] sm:$0xff]  ;;  %v563_v53 = vmul.f32 %v419_v50, %v275_v46  ;;  %v550_v60 = vmul.f32 %v406_v57, %v262_v55  ;;  %v293_v61 = vld [vmem:[%s3647_s1 + $0x1a0] sm:$0xff]  ;;  %v294_v62 = vld [vmem:[%s3647_s1 + $0x1a8] sm:$0xff]  ;;  %s3585_s28 = scalar_lea.hbm %s3650_s4, %s1790_s18 }
  0x46   : > { %v564_v54 = vmul.f32 %v420_v51, %v276_v47  ;;  %2239 = vmatprep.subr.bf16.mxu1 %v2238_v48  ;;  %v2208_v58 = vpack.c.bf16 %v532_v49, %v531_v45  ;;  %v437_v63 = vld [vmem:[#allocation2 + $0x1a0] sm:$0xff]  ;;  %v438_v1 = vld [vmem:[#allocation2 + $0x1a8] sm:$0xff]  ;;  %v263_v18 = vld [vmem:[%s3647_s1 + $0xb0] sm:$0xff] }
  0x47   : > { %v581_v2 = vmul.f32 %v437_v63, %v293_v61  ;;  %v245_v3 = vld [vmem:[%s3647_s1 + $0x20] sm:$0xff]  ;;  %v246_v4 = vld [vmem:[%s3647_s1 + $0x28] sm:$0xff]  ;;  %v2210_v5 = vpack.c.bf16 %v550_v60, %v549_v59  ;;  %v582_v6 = vmul.f32 %v438_v1, %v294_v62  ;;  %v264_v19 = vld [vmem:[%s3647_s1 + $0xb8] sm:$0xff] }
  0x48   : > { %v2240_v0 = vpack.c.bf16 %v564_v54, %v563_v53  ;;  %2209 = vmatpush3.bf16.msra.mxu0 %v2208_v58  ;;  %v389_v7 = vld [vmem:[#allocation2 + $0x20] sm:$0xff]  ;;  %v390_v8 = vld [vmem:[#allocation2 + $0x28] sm:$0xff]  ;;  %v407_v20 = vld [vmem:[#allocation2 + $0xb0] sm:$0xff] }
  0x49   : > { %v277_v9 = vld [vmem:[%s3647_s1 + $0x120] sm:$0xff]  ;;  %v533_v10 = vmul.f32 %v389_v7, %v245_v3  ;;  %v534_v11 = vmul.f32 %v390_v8, %v246_v4  ;;  %v278_v12 = vld [vmem:[%s3647_s1 + $0x128] sm:$0xff]  ;;  %2211 = vmatprep.subr.bf16.mxu0 %v2210_v5  ;;  %v2242_v15 = vpack.c.bf16 %v582_v6, %v581_v2  ;;  %v408_v22 = vld [vmem:[#allocation2 + $0xb8] sm:$0xff]  ;;  %v551_v23 = vmul.f32 %v407_v20, %v263_v18 }
  0x4a   : > { %2241 = vmatpush3.bf16.msra.mxu1 %v2240_v0  ;;  %v421_v13 = vld [vmem:[#allocation2 + $0x120] sm:$0xff]  ;;  %v422_v14 = vld [vmem:[#allocation2 + $0x128] sm:$0xff]  ;;  %v295_v24 = vld [vmem:[%s3647_s1 + $0x1b0] sm:$0xff]  ;;  %v552_v27 = vmul.f32 %v408_v22, %v264_v19 }
  0x4b   : > { %v565_v16 = vmul.f32 %v421_v13, %v277_v9  ;;  %v566_v17 = vmul.f32 %v422_v14, %v278_v12  ;;  %v2212_v21 = vpack.c.bf16 %v534_v11, %v533_v10  ;;  %v296_v25 = vld [vmem:[%s3647_s1 + $0x1b8] sm:$0xff]  ;;  %2243 = vmatprep.subr.bf16.mxu1 %v2242_v15  ;;  %v439_v28 = vld [vmem:[#allocation2 + $0x1b0] sm:$0xff]  ;;  %v265_v45 = vld [vmem:[%s3647_s1 + $0xc0] sm:$0xff] }
  0x4c   : > { %v440_v29 = vld [vmem:[#allocation2 + $0x1b8] sm:$0xff]  ;;  %v247_v30 = vld [vmem:[%s3647_s1 + $0x30] sm:$0xff]  ;;  %v583_v31 = vmul.f32 %v439_v28, %v295_v24  ;;  %v2214_v36 = vpack.c.bf16 %v552_v27, %v551_v23  ;;  %v266_v46 = vld [vmem:[%s3647_s1 + $0xc8] sm:$0xff] }
  0x4d   : > { %v2244_v26 = vpack.c.bf16 %v566_v17, %v565_v16  ;;  %2213 = vmatpush3.bf16.msra.mxu0 %v2212_v21  ;;  %v584_v32 = vmul.f32 %v440_v29, %v296_v25  ;;  %v248_v33 = vld [vmem:[%s3647_s1 + $0x38] sm:$0xff]  ;;  %v391_v34 = vld [vmem:[#allocation2 + $0x30] sm:$0xff]  ;;  %v409_v49 = vld [vmem:[#allocation2 + $0xc0] sm:$0xff] }
  0x4e   : > { %v392_v35 = vld [vmem:[#allocation2 + $0x38] sm:$0xff]  ;;  %v535_v37 = vmul.f32 %v391_v34, %v247_v30  ;;  %v279_v39 = vld [vmem:[%s3647_s1 + $0x130] sm:$0xff]  ;;  %2215 = vmatprep.subr.bf16.mxu0 %v2214_v36  ;;  %v410_v50 = vld [vmem:[#allocation2 + $0xc8] sm:$0xff]  ;;  %v553_v52 = vmul.f32 %v409_v49, %v265_v45 }
  0x4f   : > { %2245 = vmatpush3.bf16.msra.mxu1 %v2244_v26  ;;  %v536_v38 = vmul.f32 %v392_v35, %v248_v33  ;;  %v280_v40 = vld [vmem:[%s3647_s1 + $0x138] sm:$0xff]  ;;  %v423_v41 = vld [vmem:[#allocation2 + $0x130] sm:$0xff]  ;;  %v2246_v42 = vpack.c.bf16 %v584_v32, %v583_v31  ;;  %v297_v51 = vld [vmem:[%s3647_s1 + $0x1c0] sm:$0xff]  ;;  %v554_v53 = vmul.f32 %v410_v50, %v266_v46 }
  0x50   : > { %v424_v43 = vld [vmem:[#allocation2 + $0x138] sm:$0xff]  ;;  %v567_v44 = vmul.f32 %v423_v41, %v279_v39  ;;  %v298_v54 = vld [vmem:[%s3647_s1 + $0x1c8] sm:$0xff]  ;;  %v441_v55 = vld [vmem:[#allocation2 + $0x1c0] sm:$0xff] }
  0x51   : > { %v2216_v47 = vpack.c.bf16 %v536_v38, %v535_v37  ;;  %v568_v48 = vmul.f32 %v424_v43, %v280_v40  ;;  %2247 = vmatprep.subr.bf16.mxu1 %v2246_v42  ;;  %v442_v56 = vld [vmem:[#allocation2 + $0x1c8] sm:$0xff]  ;;  %v585_v58 = vmul.f32 %v441_v55, %v297_v51  ;;  %v249_v60 = vld [vmem:[%s3647_s1 + $0x40] sm:$0xff]  ;;  %v2218_v63 = vpack.c.bf16 %v554_v53, %v553_v52  ;;  %v267_v8 = vld [vmem:[%s3647_s1 + $0xd0] sm:$0xff] }
  0x52   : > { %v586_v59 = vmul.f32 %v442_v56, %v298_v54  ;;  %v250_v61 = vld [vmem:[%s3647_s1 + $0x48] sm:$0xff]  ;;  %v393_v62 = vld [vmem:[#allocation2 + $0x40] sm:$0xff]  ;;  %v268_v11 = vld [vmem:[%s3647_s1 + $0xd8] sm:$0xff] }
  0x53   : > { %2217 = vmatpush3.bf16.msra.mxu0 %v2216_v47  ;;  %v2248_v57 = vpack.c.bf16 %v568_v48, %v567_v44  ;;  %v394_v0 = vld [vmem:[#allocation2 + $0x48] sm:$0xff]  ;;  %v537_v1 = vmul.f32 %v393_v62, %v249_v60  ;;  %v281_v2 = vld [vmem:[%s3647_s1 + $0x140] sm:$0xff]  ;;  %v411_v12 = vld [vmem:[#allocation2 + $0xd0] sm:$0xff] }
  0x54   : > { %v282_v3 = vld [vmem:[%s3647_s1 + $0x148] sm:$0xff]  ;;  %v2250_v4 = vpack.c.bf16 %v586_v59, %v585_v58  ;;  %v538_v5 = vmul.f32 %v394_v0, %v250_v61  ;;  %v425_v6 = vld [vmem:[#allocation2 + $0x140] sm:$0xff]  ;;  %2219 = vmatprep.subr.bf16.mxu0 %v2218_v63  ;;  %v412_v13 = vld [vmem:[#allocation2 + $0xd8] sm:$0xff]  ;;  %v555_v15 = vmul.f32 %v411_v12, %v267_v8 }
  0x55   : > { %2249 = vmatpush3.bf16.msra.mxu1 %v2248_v57  ;;  %v426_v7 = vld [vmem:[#allocation2 + $0x148] sm:$0xff]  ;;  %v569_v9 = vmul.f32 %v425_v6, %v281_v2  ;;  %v556_v16 = vmul.f32 %v412_v13, %v268_v11  ;;  %v299_v17 = vld [vmem:[%s3647_s1 + $0x1d0] sm:$0xff]  ;;  %v300_v18 = vld [vmem:[%s3647_s1 + $0x1d8] sm:$0xff] }
  0x56   : > { %v570_v10 = vmul.f32 %v426_v7, %v282_v3  ;;  %2251 = vmatprep.subr.bf16.mxu1 %v2250_v4  ;;  %v2220_v14 = vpack.c.bf16 %v538_v5, %v537_v1  ;;  %v443_v19 = vld [vmem:[#allocation2 + $0x1d0] sm:$0xff]  ;;  %v444_v21 = vld [vmem:[#allocation2 + $0x1d8] sm:$0xff]  ;;  %v269_v38 = vld [vmem:[%s3647_s1 + $0xe0] sm:$0xff] }
  0x57   : > { %v587_v22 = vmul.f32 %v443_v19, %v299_v17  ;;  %v251_v23 = vld [vmem:[%s3647_s1 + $0x50] sm:$0xff]  ;;  %v252_v24 = vld [vmem:[%s3647_s1 + $0x58] sm:$0xff]  ;;  %v2222_v25 = vpack.c.bf16 %v556_v16, %v555_v15  ;;  %v588_v26 = vmul.f32 %v444_v21, %v300_v18  ;;  %v270_v39 = vld [vmem:[%s3647_s1 + $0xe8] sm:$0xff] }
  0x58   : > { %v2252_v20 = vpack.c.bf16 %v570_v10, %v569_v9  ;;  %2221 = vmatpush3.bf16.msra.mxu0 %v2220_v14  ;;  %v395_v27 = vld [vmem:[#allocation2 + $0x50] sm:$0xff]  ;;  %v396_v28 = vld [vmem:[#allocation2 + $0x58] sm:$0xff]  ;;  %v413_v40 = vld [vmem:[#allocation2 + $0xe0] sm:$0xff] }
  0x59   : > { %v283_v29 = vld [vmem:[%s3647_s1 + $0x150] sm:$0xff]  ;;  %v539_v30 = vmul.f32 %v395_v27, %v251_v23  ;;  %v540_v31 = vmul.f32 %v396_v28, %v252_v24  ;;  %v284_v32 = vld [vmem:[%s3647_s1 + $0x158] sm:$0xff]  ;;  %2223 = vmatprep.subr.bf16.mxu0 %v2222_v25  ;;  %v2254_v35 = vpack.c.bf16 %v588_v26, %v587_v22  ;;  %v414_v42 = vld [vmem:[#allocation2 + $0xe8] sm:$0xff]  ;;  %v557_v43 = vmul.f32 %v413_v40, %v269_v38 }
  0x5a   : > { %2253 = vmatpush3.bf16.msra.mxu1 %v2252_v20  ;;  %v427_v33 = vld [vmem:[#allocation2 + $0x150] sm:$0xff]  ;;  %v428_v34 = vld [vmem:[#allocation2 + $0x158] sm:$0xff]  ;;  %v301_v44 = vld [vmem:[%s3647_s1 + $0x1e0] sm:$0xff]  ;;  %v558_v47 = vmul.f32 %v414_v42, %v270_v39 }
  0x5b   : > { %v571_v36 = vmul.f32 %v427_v33, %v283_v29  ;;  %v572_v37 = vmul.f32 %v428_v34, %v284_v32  ;;  %v2224_v41 = vpack.c.bf16 %v540_v31, %v539_v30  ;;  %v302_v45 = vld [vmem:[%s3647_s1 + $0x1e8] sm:$0xff]  ;;  %2255 = vmatprep.subr.bf16.mxu1 %v2254_v35  ;;  %v445_v48 = vld [vmem:[#allocation2 + $0x1e0] sm:$0xff]  ;;  %v271_v1 = vld [vmem:[%s3647_s1 + $0xf0] sm:$0xff] }
  0x5c   : > { %v446_v49 = vld [vmem:[#allocation2 + $0x1e8] sm:$0xff]  ;;  %v253_v50 = vld [vmem:[%s3647_s1 + $0x60] sm:$0xff]  ;;  %v589_v51 = vmul.f32 %v445_v48, %v301_v44  ;;  %v2226_v56 = vpack.c.bf16 %v558_v47, %v557_v43  ;;  %v272_v2 = vld [vmem:[%s3647_s1 + $0xf8] sm:$0xff] }
  0x5d   : > { %v2256_v46 = vpack.c.bf16 %v572_v37, %v571_v36  ;;  %2225 = vmatpush3.bf16.msra.mxu0 %v2224_v41  ;;  %v590_v52 = vmul.f32 %v446_v49, %v302_v45  ;;  %v254_v53 = vld [vmem:[%s3647_s1 + $0x68] sm:$0xff]  ;;  %v397_v54 = vld [vmem:[#allocation2 + $0x60] sm:$0xff]  ;;  %v415_v5 = vld [vmem:[#allocation2 + $0xf0] sm:$0xff] }
  0x5e   : > { %v398_v55 = vld [vmem:[#allocation2 + $0x68] sm:$0xff]  ;;  %v541_v57 = vmul.f32 %v397_v54, %v253_v50  ;;  %v285_v59 = vld [vmem:[%s3647_s1 + $0x160] sm:$0xff]  ;;  %2227 = vmatprep.subr.bf16.mxu0 %v2226_v56  ;;  %v416_v6 = vld [vmem:[#allocation2 + $0xf8] sm:$0xff]  ;;  %v559_v8 = vmul.f32 %v415_v5, %v271_v1 }
  0x5f   : > { %2257 = vmatpush3.bf16.msra.mxu1 %v2256_v46  ;;  %v542_v58 = vmul.f32 %v398_v55, %v254_v53  ;;  %v286_v60 = vld [vmem:[%s3647_s1 + $0x168] sm:$0xff]  ;;  %v429_v61 = vld [vmem:[#allocation2 + $0x160] sm:$0xff]  ;;  %v2258_v62 = vpack.c.bf16 %v590_v52, %v589_v51  ;;  %v303_v7 = vld [vmem:[%s3647_s1 + $0x1f0] sm:$0xff]  ;;  %v560_v9 = vmul.f32 %v416_v6, %v272_v2 }
  0x60   : > { %v430_v63 = vld [vmem:[#allocation2 + $0x168] sm:$0xff]  ;;  %v573_v0 = vmul.f32 %v429_v61, %v285_v59  ;;  %v304_v10 = vld [vmem:[%s3647_s1 + $0x1f8] sm:$0xff]  ;;  %v447_v11 = vld [vmem:[#allocation2 + $0x1f0] sm:$0xff] }
  0x61   : > { %v2228_v3 = vpack.c.bf16 %v542_v58, %v541_v57  ;;  %v574_v4 = vmul.f32 %v430_v63, %v286_v60  ;;  %2259 = vmatprep.subr.bf16.mxu1 %v2258_v62  ;;  %v448_v12 = vld [vmem:[#allocation2 + $0x1f8] sm:$0xff]  ;;  %v591_v14 = vmul.f32 %v447_v11, %v303_v7  ;;  %v255_v16 = vld [vmem:[%s3647_s1 + $0x70] sm:$0xff]  ;;  %v2230_v19 = vpack.c.bf16 %v560_v9, %v559_v8  ;;  %v689_v28 = vld [vmem:[%s2936_s12 + $0x1] sm:$0xff] }
  0x62   : > { %v592_v15 = vmul.f32 %v448_v12, %v304_v10  ;;  %v256_v17 = vld [vmem:[%s3647_s1 + $0x78] sm:$0xff]  ;;  %v399_v18 = vld [vmem:[#allocation2 + $0x70] sm:$0xff]  ;;  %889 = vmatprep.mubr.f32.mxu0 %v689_v28  ;;  %v673_v33 = vld [vmem:[%s2936_s12] sm:$0xff] }
  0x63   : > { %2229 = vmatpush3.bf16.msra.mxu0 %v2228_v3  ;;  %v2260_v13 = vpack.c.bf16 %v574_v4, %v573_v0  ;;  %v400_v20 = vld [vmem:[#allocation2 + $0x78] sm:$0xff]  ;;  %v543_v21 = vmul.f32 %v399_v18, %v255_v16  ;;  %v287_v22 = vld [vmem:[%s3647_s1 + $0x170] sm:$0xff]  ;;  %v321_v34 = vld [vmem:[%s3647_s1 + $0x280] sm:$0xff] }
  0x64   : > { %v288_v23 = vld [vmem:[%s3647_s1 + $0x178] sm:$0xff]  ;;  %v2262_v24 = vpack.c.bf16 %v592_v15, %v591_v14  ;;  %v544_v25 = vmul.f32 %v400_v20, %v256_v17  ;;  %v431_v26 = vld [vmem:[#allocation2 + $0x170] sm:$0xff]  ;;  %2231 = vmatprep.subr.bf16.mxu0 %v2230_v19  ;;  %v322_v35 = vld [vmem:[%s3647_s1 + $0x288] sm:$0xff] }
  0x65   : > { %2261 = vmatpush3.bf16.msra.mxu1 %v2260_v13  ;;  %v432_v27 = vld [vmem:[#allocation2 + $0x178] sm:$0xff]  ;;  %v575_v29 = vmul.f32 %v431_v26, %v287_v22  ;;  %v465_v36 = vld [vmem:[#allocation2 + $0x280] sm:$0xff]  ;;  %v466_v39 = vld [vmem:[#allocation2 + $0x288] sm:$0xff] }
  0x66   : > { %v576_v30 = vmul.f32 %v432_v27, %v288_v23  ;;  %v2952_v31 = vld [vmem:[%s2936_s12 + $0x18] sm:$0xff]  ;;  %2263 = vmatprep.subr.bf16.mxu1 %v2262_v24  ;;  %v2232_v32 = vpack.c.bf16 %v544_v25, %v543_v21  ;;  %v705_v38 = vld [vmem:[%s2936_s12 + $0x2] sm:$0xff]  ;;  %v609_v40 = vmul.f32 %v465_v36, %v321_v34  ;;  %v610_v43 = vmul.f32 %v466_v39, %v322_v35  ;;  %v706_v2 = vld [vmem:[%s2936_s12 + $0xa] sm:$0xff] }
  0x67   : > { %1034 = vmatprep.mubr.f32.mxu1 %v2952_v31  ;;  %v353_v41 = vld [vmem:[%s3647_s1 + $0x380] sm:$0xff]  ;;  %v354_v42 = vld [vmem:[%s3647_s1 + $0x388] sm:$0xff]  ;;  %v2991_v4 = vld [vmem:[%s2936_s12 + $0x30] sm:$0xff] }
  0x68   : > { %v2264_v37 = vpack.c.bf16 %v576_v30, %v575_v29  ;;  %2233 = vmatpush3.bf16.msra.mxu0 %v2232_v32  ;;  %v497_v44 = vld [vmem:[#allocation2 + $0x380] sm:$0xff]  ;;  %v498_v45 = vld [vmem:[#allocation2 + $0x388] sm:$0xff]  ;;  %v2266_v52 = vpack.c.bf16 %v610_v43, %v609_v40  ;;  %v323_v5 = vld [vmem:[%s3647_s1 + $0x290] sm:$0xff] }
  0x69   : > { %v305_v46 = vld [vmem:[%s3647_s1 + $0x200] sm:$0xff]  ;;  %v641_v47 = vmul.f32 %v497_v44, %v353_v41  ;;  %v642_v48 = vmul.f32 %v498_v45, %v354_v42  ;;  %v306_v49 = vld [vmem:[%s3647_s1 + $0x208] sm:$0xff]  ;;  %v324_v7 = vld [vmem:[%s3647_s1 + $0x298] sm:$0xff] }
  0x6a   : > { %2265 = vmatpush3.bf16.msra.mxu1 %v2264_v37  ;;  %v449_v50 = vld [vmem:[#allocation2 + $0x200] sm:$0xff]  ;;  %v450_v51 = vld [vmem:[#allocation2 + $0x208] sm:$0xff]  ;;  %2267 = vmatprep.subr.bf16.mxu0 %v2266_v52  ;;  %v467_v8 = vld [vmem:[#allocation2 + $0x290] sm:$0xff] }
  0x6b   : > { %v593_v53 = vmul.f32 %v449_v50, %v305_v46  ;;  %v594_v54 = vmul.f32 %v450_v51, %v306_v49  ;;  %v337_v55 = vld [vmem:[%s3647_s1 + $0x300] sm:$0xff]  ;;  %v338_v56 = vld [vmem:[%s3647_s1 + $0x308] sm:$0xff]  ;;  %890 = vmatmul.mubr.f32.vlgmr.msra.gmra.mrb[0].mxu0 %v673_v33  ;;  %v2298_v58 = vpack.c.bf16 %v642_v48, %v641_v47  ;;  %v468_v9 = vld [vmem:[#allocation2 + $0x298] sm:$0xff]  ;;  %v611_v10 = vmul.f32 %v467_v8, %v323_v5 }
  0x6c   : > { %v481_v57 = vld [vmem:[#allocation2 + $0x300] sm:$0xff]  ;;  %v482_v59 = vld [vmem:[#allocation2 + $0x308] sm:$0xff]  ;;  %v612_v11 = vmul.f32 %v468_v9, %v324_v7  ;;  %v355_v12 = vld [vmem:[%s3647_s1 + $0x390] sm:$0xff] }
  0x6d   : > { %v625_v60 = vmul.f32 %v481_v57, %v337_v55  ;;  %v690_v61 = vld [vmem:[%s2936_s12 + $0x9] sm:$0xff]  ;;  %v2983_v62 = vld [vmem:[%s2936_s12 + $0x20] sm:$0xff]  ;;  %1035 = vmatmul.mubr.f32.vlgmr.msra.gmra.mrb[0].mxu1 %v705_v38  ;;  %v2268_v63 = vpack.c.bf16 %v594_v54, %v593_v53  ;;  %v626_v0 = vmul.f32 %v482_v59, %v338_v56  ;;  %2299 = vmatprep.subr.bf16.mxu1 %v2298_v58  ;;  %v356_v13 = vld [vmem:[%s3647_s1 + $0x398] sm:$0xff] }
  0x6e   : > { %v674_v1 = vld [vmem:[%s2936_s12 + $0x8] sm:$0xff]  ;;  %894 = vmatprep.mubr.f32.mxu0 %v690_v61  ;;  %v2988_v3 = vld [vmem:[%s2936_s12 + $0x19] sm:$0xff]  ;;  %1039 = vmatprep.mubr.f32.mxu1 %v2983_v62  ;;  %v499_v14 = vld [vmem:[#allocation2 + $0x390] sm:$0xff]  ;;  %v2270_v20 = vpack.c.bf16 %v612_v11, %v611_v10 }
  0x6f   : > { %2269 = vmatpush3.bf16.msra.mxu0 %v2268_v63  ;;  %v2300_v6 = vpack.c.bf16 %v626_v0, %v625_v60  ;;  %v3008_v15 = vld [vmem:[%s2936_s12 + $0x1a] sm:$0xff]  ;;  %v643_v17 = vmul.f32 %v499_v14, %v355_v12  ;;  %v307_v18 = vld [vmem:[%s3647_s1 + $0x210] sm:$0xff]  ;;  %v3032_v37 = vld [vmem:[%s2936_s12 + $0x22] sm:$0xff] }
  0x70   : > { %895 = vmatmul.mubr.f32.gmra.mrb[2].mxu0 %v674_v1  ;;  %v500_v16 = vld [vmem:[#allocation2 + $0x398] sm:$0xff]  ;;  %v451_v22 = vld [vmem:[#allocation2 + $0x210] sm:$0xff]  ;;  %2271 = vmatprep.subr.bf16.mxu0 %v2270_v20  ;;  %v3025_v34 = vld [vmem:[%s2936_s12 + $0x21] sm:$0xff] }
  0x71   : > { %2301 = vmatpush3.bf16.msra.mxu1 %v2300_v6  ;;  %899 = vmatprep.mubr.f32.mxu0 %v2988_v3  ;;  %v308_v19 = vld [vmem:[%s3647_s1 + $0x218] sm:$0xff]  ;;  %v644_v21 = vmul.f32 %v500_v16, %v356_v13  ;;  %v339_v24 = vld [vmem:[%s3647_s1 + $0x310] sm:$0xff]  ;;  %v595_v25 = vmul.f32 %v451_v22, %v307_v18  ;;  %v325_v40 = vld [vmem:[%s3647_s1 + $0x2a0] sm:$0xff] }
  0x72   : > { %1040 = vmatmul.mubr.f32.gmra.mrb[2].mxu1 %v706_v2  ;;  %v452_v23 = vld [vmem:[#allocation2 + $0x218] sm:$0xff]  ;;  %v483_v28 = vld [vmem:[#allocation2 + $0x310] sm:$0xff]  ;;  %v326_v41 = vld [vmem:[%s3647_s1 + $0x2a8] sm:$0xff] }
  0x73   : > { %1044 = vmatprep.mubr.f32.mxu1 %v2991_v4  ;;  %v596_v26 = vmul.f32 %v452_v23, %v308_v19  ;;  %v340_v27 = vld [vmem:[%s3647_s1 + $0x318] sm:$0xff]  ;;  %v2302_v30 = vpack.c.bf16 %v644_v21, %v643_v17  ;;  %v627_v32 = vmul.f32 %v483_v28, %v339_v24  ;;  %v469_v42 = vld [vmem:[#allocation2 + $0x2a0] sm:$0xff]  ;;  %v470_v43 = vld [vmem:[#allocation2 + $0x2a8] sm:$0xff] }
  0x74   : > { %v484_v29 = vld [vmem:[#allocation2 + $0x318] sm:$0xff]  ;;  %900 = vmatmul.mubr.f32.gmra.mrb[4].mxu0 %v2952_v31  ;;  %v3039_v31 = vld [vmem:[%s2936_s12 + $0x48] sm:$0xff]  ;;  %v613_v44 = vmul.f32 %v469_v42, %v325_v40  ;;  %v357_v45 = vld [vmem:[%s3647_s1 + $0x3a0] sm:$0xff]  ;;  %v614_v47 = vmul.f32 %v470_v43, %v326_v41 }
  0x75   : > { %v628_v33 = vmul.f32 %v484_v29, %v340_v27  ;;  %v3028_v35 = vld [vmem:[%s2936_s12 + $0x38] sm:$0xff]  ;;  %v2272_v36 = vpack.c.bf16 %v596_v26, %v595_v25  ;;  %904 = vmatprep.mubr.f32.mxu0 %v3025_v34  ;;  %2303 = vmatprep.subr.bf16.mxu1 %v2302_v30  ;;  %v358_v46 = vld [vmem:[%s3647_s1 + $0x3a8] sm:$0xff]  ;;  %v501_v48 = vld [vmem:[#allocation2 + $0x3a0] sm:$0xff] }
  0x76   : > { %v3035_v38 = vld [vmem:[%s2936_s12 + $0x31] sm:$0xff]  ;;  %1045 = vmatmul.mubr.f32.gmra.mrb[4].mxu1 %v3008_v15  ;;  %v502_v49 = vld [vmem:[#allocation2 + $0x3a8] sm:$0xff]  ;;  %v309_v50 = vld [vmem:[%s3647_s1 + $0x220] sm:$0xff]  ;;  %v645_v51 = vmul.f32 %v501_v48, %v357_v45  ;;  %v2274_v56 = vpack.c.bf16 %v614_v47, %v613_v44 }
  0x77   : > { %v2304_v39 = vpack.c.bf16 %v628_v33, %v627_v32  ;;  %2273 = vmatpush3.bf16.msra.mxu0 %v2272_v36  ;;  %1049 = vmatprep.mubr.f32.mxu1 %v3028_v35  ;;  %v646_v52 = vmul.f32 %v502_v49, %v358_v46  ;;  %v310_v53 = vld [vmem:[%s3647_s1 + $0x228] sm:$0xff]  ;;  %v453_v54 = vld [vmem:[#allocation2 + $0x220] sm:$0xff]  ;;  %v3078_v7 = vld [vmem:[%s2936_s12 + $0x50] sm:$0xff] }
  0x78   : > { %905 = vmatmul.mubr.f32.gmra.mrb[6].mxu0 %v2983_v62  ;;  %v454_v55 = vld [vmem:[#allocation2 + $0x228] sm:$0xff]  ;;  %v597_v57 = vmul.f32 %v453_v54, %v309_v50  ;;  %v341_v59 = vld [vmem:[%s3647_s1 + $0x320] sm:$0xff]  ;;  %v3071_v62 = vld [vmem:[%s2936_s12 + $0x32] sm:$0xff]  ;;  %2275 = vmatprep.subr.bf16.mxu0 %v2274_v56 }
  0x79   : > { %2305 = vmatpush3.bf16.msra.mxu1 %v2304_v39  ;;  %909 = vmatprep.mubr.f32.mxu0 %v3035_v38  ;;  %v598_v58 = vmul.f32 %v454_v55, %v310_v53  ;;  %v342_v60 = vld [vmem:[%s3647_s1 + $0x328] sm:$0xff]  ;;  %v485_v61 = vld [vmem:[#allocation2 + $0x320] sm:$0xff]  ;;  %v2306_v63 = vpack.c.bf16 %v646_v52, %v645_v51  ;;  %v327_v10 = vld [vmem:[%s3647_s1 + $0x2b0] sm:$0xff] }
  0x7a   : > { %1050 = vmatmul.mubr.f32.gmra.mrb[6].mxu1 %v3032_v37  ;;  %v486_v0 = vld [vmem:[#allocation2 + $0x328] sm:$0xff]  ;;  %v629_v1 = vmul.f32 %v485_v61, %v341_v59  ;;  %v3074_v2 = vld [vmem:[%s2936_s12 + $0x39] sm:$0xff]  ;;  %v471_v14 = vld [vmem:[#allocation2 + $0x2b0] sm:$0xff] }
  0x7b   : > { %1054 = vmatprep.mubr.f32.mxu1 %v3039_v31  ;;  %v2276_v5 = vpack.c.bf16 %v598_v58, %v597_v57  ;;  %v630_v6 = vmul.f32 %v486_v0, %v342_v60  ;;  %2307 = vmatprep.subr.bf16.mxu1 %v2306_v63  ;;  %v3082_v8 = vld [vmem:[%s2936_s12 + $0x3a] sm:$0xff]  ;;  %v3085_v9 = vld [vmem:[%s2936_s12 + $0x49] sm:$0xff]  ;;  %v615_v18 = vmul.f32 %v471_v14, %v327_v10  ;;  %v3120_v42 = vld [vmem:[%s2936_s12 + $0x51] sm:$0xff] }
  0x7c   : > { %910 = vmatmul.mubr.f32.gmra.mrb[8].mxu0 %v2991_v4  ;;  %v328_v11 = vld [vmem:[%s3647_s1 + $0x2b8] sm:$0xff]  ;;  %v3095_v13 = vld [vmem:[%s2936_s12 + $0x60] sm:$0xff]  ;;  %v359_v17 = vld [vmem:[%s3647_s1 + $0x3b0] sm:$0xff] }
  0x7d   : > { %914 = vmatprep.mubr.f32.mxu0 %v3074_v2  ;;  %2277 = vmatpush3.bf16.msra.mxu0 %v2276_v5  ;;  %v2308_v12 = vpack.c.bf16 %v630_v6, %v629_v1  ;;  %v472_v16 = vld [vmem:[#allocation2 + $0x2b8] sm:$0xff]  ;;  %v503_v21 = vld [vmem:[#allocation2 + $0x3b0] sm:$0xff]  ;;  %v3128_v47 = vld [vmem:[%s2936_s12 + $0x68] sm:$0xff] }
  0x7e   : > { %1055 = vmatmul.mubr.f32.gmra.mrb[8].mxu1 %v3071_v62  ;;  %v616_v19 = vmul.f32 %v472_v16, %v328_v11  ;;  %v360_v20 = vld [vmem:[%s3647_s1 + $0x3b8] sm:$0xff]  ;;  %v647_v23 = vmul.f32 %v503_v21, %v359_v17  ;;  %v311_v25 = vld [vmem:[%s3647_s1 + $0x230] sm:$0xff]  ;;  %v3131_v48 = vld [vmem:[%s2936_s12 + $0x61] sm:$0xff] }
  0x7f   : > { %1059 = vmatprep.mubr.f32.mxu1 %v3078_v7  ;;  %v504_v22 = vld [vmem:[#allocation2 + $0x3b8] sm:$0xff]  ;;  %2309 = vmatpush3.bf16.msra.mxu1 %v2308_v12  ;;  %v455_v27 = vld [vmem:[#allocation2 + $0x230] sm:$0xff]  ;;  %v329_v49 = vld [vmem:[%s3647_s1 + $0x2c0] sm:$0xff] }
  0x80   : > { %915 = vmatmul.mubr.f32.gmra.mrb[10].mxu0 %v3028_v35  ;;  %v648_v24 = vmul.f32 %v504_v22, %v360_v20  ;;  %v312_v26 = vld [vmem:[%s3647_s1 + $0x238] sm:$0xff]  ;;  %v2278_v28 = vpack.c.bf16 %v616_v19, %v615_v18  ;;  %v599_v30 = vmul.f32 %v455_v27, %v311_v25  ;;  %v343_v32 = vld [vmem:[%s3647_s1 + $0x330] sm:$0xff]  ;;  %v330_v52 = vld [vmem:[%s3647_s1 + $0x2c8] sm:$0xff] }
  0x81   : > { %919 = vmatprep.mubr.f32.mxu0 %v3085_v9  ;;  %v456_v29 = vld [vmem:[#allocation2 + $0x238] sm:$0xff]  ;;  %v487_v40 = vld [vmem:[#allocation2 + $0x330] sm:$0xff]  ;;  %v473_v53 = vld [vmem:[#allocation2 + $0x2c0] sm:$0xff] }
  0x82   : > { %v344_v33 = vld [vmem:[%s3647_s1 + $0x338] sm:$0xff]  ;;  %1060 = vmatmul.mubr.f32.gmra.mrb[10].mxu1 %v3082_v8  ;;  %v2310_v36 = vpack.c.bf16 %v648_v24, %v647_v23  ;;  %v600_v39 = vmul.f32 %v456_v29, %v312_v26  ;;  %v3124_v43 = vld [vmem:[%s2936_s12 + $0x4a] sm:$0xff]  ;;  %2279 = vmatprep.subr.bf16.mxu0 %v2278_v28  ;;  %v631_v44 = vmul.f32 %v487_v40, %v343_v32  ;;  %v361_v58 = vld [vmem:[%s3647_s1 + $0x3c0] sm:$0xff] }
  0x83   : > { %v488_v41 = vld [vmem:[#allocation2 + $0x338] sm:$0xff]  ;;  %1064 = vmatprep.mubr.f32.mxu1 %v3095_v13  ;;  %v474_v54 = vld [vmem:[#allocation2 + $0x2c8] sm:$0xff]  ;;  %v617_v56 = vmul.f32 %v473_v53, %v329_v49  ;;  %v505_v60 = vld [vmem:[#allocation2 + $0x3c0] sm:$0xff] }
  0x84   : > { %v632_v45 = vmul.f32 %v488_v41, %v344_v33  ;;  %920 = vmatmul.mubr.f32.gmra.mrb[12].mxu0 %v3039_v31  ;;  %2311 = vmatprep.subr.bf16.mxu1 %v2310_v36  ;;  %v2280_v46 = vpack.c.bf16 %v600_v39, %v599_v30  ;;  %v3138_v51 = vld [vmem:[%s2936_s12 + $0x52] sm:$0xff]  ;;  %v618_v57 = vmul.f32 %v474_v54, %v330_v52  ;;  %v362_v59 = vld [vmem:[%s3647_s1 + $0x3c8] sm:$0xff]  ;;  %v313_v0 = vld [vmem:[%s3647_s1 + $0x240] sm:$0xff] }
  0x85   : > { %924 = vmatprep.mubr.f32.mxu0 %v3120_v42  ;;  %v3145_v55 = vld [vmem:[%s2936_s12 + $0x78] sm:$0xff]  ;;  %v506_v61 = vld [vmem:[#allocation2 + $0x3c8] sm:$0xff]  ;;  %v649_v63 = vmul.f32 %v505_v60, %v361_v58  ;;  %v457_v10 = vld [vmem:[#allocation2 + $0x240] sm:$0xff] }
  0x86   : > { %v2312_v50 = vpack.c.bf16 %v632_v45, %v631_v44  ;;  %1065 = vmatmul.mubr.f32.gmra.mrb[12].mxu1 %v3124_v43  ;;  %2281 = vmatpush3.bf16.msra.mxu0 %v2280_v46  ;;  %v314_v1 = vld [vmem:[%s3647_s1 + $0x248] sm:$0xff]  ;;  %v2282_v5 = vpack.c.bf16 %v618_v57, %v617_v56  ;;  %v650_v6 = vmul.f32 %v506_v61, %v362_v59  ;;  %v345_v12 = vld [vmem:[%s3647_s1 + $0x340] sm:$0xff]  ;;  %v331_v29 = vld [vmem:[%s3647_s1 + $0x2d0] sm:$0xff] }
  0x87   : > { %1069 = vmatprep.mubr.f32.mxu1 %v3128_v47  ;;  %v458_v11 = vld [vmem:[#allocation2 + $0x248] sm:$0xff]  ;;  %v601_v14 = vmul.f32 %v457_v10, %v313_v0  ;;  %v489_v18 = vld [vmem:[#allocation2 + $0x340] sm:$0xff]  ;;  %v332_v30 = vld [vmem:[%s3647_s1 + $0x2d8] sm:$0xff] }
  0x88   : > { %2313 = vmatpush3.bf16.msra.mxu1 %v2312_v50  ;;  %925 = vmatmul.mubr.f32.gmra.mrb[14].mxu0 %v3078_v7  ;;  %v602_v16 = vmul.f32 %v458_v11, %v314_v1  ;;  %v346_v17 = vld [vmem:[%s3647_s1 + $0x348] sm:$0xff]  ;;  %v2314_v20 = vpack.c.bf16 %v650_v6, %v649_v63  ;;  %v633_v21 = vmul.f32 %v489_v18, %v345_v12  ;;  %v3177_v26 = vld [vmem:[%s2936_s12 + $0x80] sm:$0xff]  ;;  %v475_v32 = vld [vmem:[#allocation2 + $0x2d0] sm:$0xff] }
  0x89   : > { %929 = vmatprep.mubr.f32.mxu0 %v3131_v48  ;;  %v490_v19 = vld [vmem:[#allocation2 + $0x348] sm:$0xff]  ;;  %2283 = vmatprep.subr.bf16.mxu0 %v2282_v5  ;;  %v3181_v28 = vld [vmem:[%s2936_s12 + $0x79] sm:$0xff]  ;;  %v619_v39 = vmul.f32 %v475_v32, %v331_v29  ;;  %v363_v40 = vld [vmem:[%s3647_s1 + $0x3d0] sm:$0xff] }
  0x8a   : > { %1070 = vmatmul.mubr.f32.gmra.mrb[14].mxu1 %v3138_v51  ;;  %v634_v22 = vmul.f32 %v490_v19, %v346_v17  ;;  %v3170_v23 = vld [vmem:[%s2936_s12 + $0x69] sm:$0xff]  ;;  %v2284_v25 = vpack.c.bf16 %v602_v16, %v601_v14  ;;  %2315 = vmatprep.subr.bf16.mxu1 %v2314_v20  ;;  %v476_v36 = vld [vmem:[#allocation2 + $0x2d8] sm:$0xff]  ;;  %v3223_v14 = vld [vmem:[%s2936_s12 + $0x81] sm:$0xff] }
  0x8b   : > { %1074 = vmatprep.mubr.f32.mxu1 %v3145_v55  ;;  %v3174_v24 = vld [vmem:[%s2936_s12 + $0x62] sm:$0xff]  ;;  %v3191_v33 = vld [vmem:[%s2936_s12 + $0x6a] sm:$0xff]  ;;  %v364_v41 = vld [vmem:[%s3647_s1 + $0x3d8] sm:$0xff]  ;;  %v620_v45 = vmul.f32 %v476_v36, %v332_v30 }
  0x8c   : > { %930 = vmatmul.mubr.f32.gmra.mrb[16].mxu0 %v3095_v13  ;;  %v2316_v27 = vpack.c.bf16 %v634_v22, %v633_v21  ;;  %v3201_v44 = vld [vmem:[%s2936_s12 + $0x90] sm:$0xff]  ;;  %v508_v49 = vld [vmem:[#allocation2 + $0x3d8] sm:$0xff]  ;;  %v333_v17 = vld [vmem:[%s3647_s1 + $0x2e0] sm:$0xff] }
  0x8d   : > { %2285 = vmatpush3.bf16.msra.mxu0 %v2284_v25  ;;  %934 = vmatprep.mubr.f32.mxu0 %v3170_v23  ;;  %v507_v46 = vld [vmem:[#allocation2 + $0x3d0] sm:$0xff]  ;;  %v652_v53 = vmul.f32 %v508_v49, %v364_v41  ;;  %v316_v54 = vld [vmem:[%s3647_s1 + $0x258] sm:$0xff]  ;;  %v2286_v58 = vpack.c.bf16 %v620_v45, %v619_v39  ;;  %v334_v18 = vld [vmem:[%s3647_s1 + $0x2e8] sm:$0xff] }
  0x8e   : > { %1075 = vmatmul.mubr.f32.gmra.mrb[16].mxu1 %v3174_v24  ;;  %v315_v50 = vld [vmem:[%s3647_s1 + $0x250] sm:$0xff]  ;;  %v651_v52 = vmul.f32 %v507_v46, %v363_v40  ;;  %v460_v57 = vld [vmem:[#allocation2 + $0x258] sm:$0xff]  ;;  %v477_v21 = vld [vmem:[#allocation2 + $0x2e0] sm:$0xff] }
  0x8f   : > { %2317 = vmatpush3.bf16.msra.mxu1 %v2316_v27  ;;  %1079 = vmatprep.mubr.f32.mxu1 %v3177_v26  ;;  %v459_v56 = vld [vmem:[#allocation2 + $0x250] sm:$0xff]  ;;  %v604_v60 = vmul.f32 %v460_v57, %v316_v54  ;;  %v348_v63 = vld [vmem:[%s3647_s1 + $0x358] sm:$0xff]  ;;  %v478_v22 = vld [vmem:[#allocation2 + $0x2e8] sm:$0xff]  ;;  %v621_v29 = vmul.f32 %v477_v21, %v333_v17 }
  0x90   : > { %935 = vmatmul.mubr.f32.gmra.mrb[18].mxu0 %v3128_v47  ;;  %v603_v59 = vmul.f32 %v459_v56, %v315_v50  ;;  %v347_v61 = vld [vmem:[%s3647_s1 + $0x350] sm:$0xff]  ;;  %v2318_v1 = vpack.c.bf16 %v652_v53, %v651_v52  ;;  %v492_v5 = vld [vmem:[#allocation2 + $0x358] sm:$0xff]  ;;  %2287 = vmatprep.subr.bf16.mxu0 %v2286_v58  ;;  %v365_v25 = vld [vmem:[%s3647_s1 + $0x3e0] sm:$0xff]  ;;  %v622_v30 = vmul.f32 %v478_v22, %v334_v18 }
  0x91   : > { %v491_v0 = vld [vmem:[#allocation2 + $0x350] sm:$0xff]  ;;  %939 = vmatprep.mubr.f32.mxu0 %v3181_v28  ;;  %v3220_v10 = vld [vmem:[%s2936_s12 + $0x7a] sm:$0xff]  ;;  %v636_v12 = vmul.f32 %v492_v5, %v348_v63  ;;  %v3244_v27 = vld [vmem:[%s2936_s12 + $0x82] sm:$0xff] }
  0x92   : > { %v635_v6 = vmul.f32 %v491_v0, %v347_v61  ;;  %1080 = vmatmul.mubr.f32.gmra.mrb[18].mxu1 %v3191_v33  ;;  %v2288_v11 = vpack.c.bf16 %v604_v60, %v603_v59  ;;  %2319 = vmatprep.subr.bf16.mxu1 %v2318_v1  ;;  %v3227_v16 = vld [vmem:[%s2936_s12 + $0x98] sm:$0xff]  ;;  %v366_v32 = vld [vmem:[%s3647_s1 + $0x3e8] sm:$0xff]  ;;  %v509_v36 = vld [vmem:[#allocation2 + $0x3e0] sm:$0xff]  ;;  %v2290_v50 = vpack.c.bf16 %v622_v30, %v621_v29 }
  0x93   : > { %1084 = vmatprep.mubr.f32.mxu1 %v3201_v44  ;;  %v3237_v20 = vld [vmem:[%s2936_s12 + $0x91] sm:$0xff]  ;;  %v510_v39 = vld [vmem:[#allocation2 + $0x3e8] sm:$0xff]  ;;  %v653_v40 = vmul.f32 %v509_v36, %v365_v25  ;;  %v317_v45 = vld [vmem:[%s3647_s1 + $0x260] sm:$0xff] }
  0x94   : > { %940 = vmatmul.mubr.f32.gmra.mrb[20].mxu0 %v3145_v55  ;;  %v2320_v19 = vpack.c.bf16 %v636_v12, %v635_v6  ;;  %v654_v41 = vmul.f32 %v510_v39, %v366_v32  ;;  %v318_v46 = vld [vmem:[%s3647_s1 + $0x268] sm:$0xff]  ;;  %v461_v49 = vld [vmem:[#allocation2 + $0x260] sm:$0xff]  ;;  %v3269_v63 = vld [vmem:[%s2936_s12 + $0x92] sm:$0xff] }
  0x95   : > { %2289 = vmatpush3.bf16.msra.mxu0 %v2288_v11  ;;  %944 = vmatprep.mubr.f32.mxu0 %v3223_v14  ;;  %v462_v52 = vld [vmem:[#allocation2 + $0x268] sm:$0xff]  ;;  %v605_v53 = vmul.f32 %v461_v49, %v317_v45  ;;  %v349_v54 = vld [vmem:[%s3647_s1 + $0x360] sm:$0xff]  ;;  %v3276_v11 = vld [vmem:[%s2936_s12 + $0xb0] sm:$0xff] }
  0x96   : > { %1085 = vmatmul.mubr.f32.gmra.mrb[20].mxu1 %v3220_v10  ;;  %v350_v56 = vld [vmem:[%s3647_s1 + $0x368] sm:$0xff]  ;;  %v2322_v58 = vpack.c.bf16 %v654_v41, %v653_v40  ;;  %v606_v59 = vmul.f32 %v462_v52, %v318_v46  ;;  %v493_v60 = vld [vmem:[#allocation2 + $0x360] sm:$0xff]  ;;  %2291 = vmatprep.subr.bf16.mxu0 %v2290_v50  ;;  %v335_v12 = vld [vmem:[%s3647_s1 + $0x2f0] sm:$0xff] }
  0x97   : > { %2321 = vmatpush3.bf16.msra.mxu1 %v2320_v19  ;;  %1089 = vmatprep.mubr.f32.mxu1 %v3227_v16  ;;  %v3265_v57 = vld [vmem:[%s2936_s12 + $0xa8] sm:$0xff]  ;;  %v637_v0 = vmul.f32 %v493_v60, %v349_v54  ;;  %v3273_v6 = vld [vmem:[%s2936_s12 + $0x99] sm:$0xff]  ;;  %v479_v19 = vld [vmem:[#allocation2 + $0x2f0] sm:$0xff] }
  0x98   : > { %945 = vmatmul.mubr.f32.gmra.mrb[22].mxu0 %v3177_v26  ;;  %v494_v61 = vld [vmem:[#allocation2 + $0x368] sm:$0xff]  ;;  %2323 = vmatprep.subr.bf16.mxu1 %v2322_v58  ;;  %v2292_v5 = vpack.c.bf16 %v606_v59, %v605_v53  ;;  %v336_v18 = vld [vmem:[%s3647_s1 + $0x2f8] sm:$0xff]  ;;  %v623_v25 = vmul.f32 %v479_v19, %v335_v12  ;;  %v367_v30 = vld [vmem:[%s3647_s1 + $0x3f0] sm:$0xff] }
  0x99   : > { %949 = vmatprep.mubr.f32.mxu0 %v3237_v20  ;;  %v638_v1 = vmul.f32 %v494_v61, %v350_v56  ;;  %v480_v21 = vld [vmem:[#allocation2 + $0x2f8] sm:$0xff]  ;;  %v3287_v22 = vld [vmem:[%s2936_s12 + $0xa9] sm:$0xff]  ;;  %v369_v19 = vld [vmem:[%s3647_s1 + $0x400] sm:$0xff] }
  0x9a   : > { %1090 = vmatmul.mubr.f32.gmra.mrb[22].mxu1 %v3244_v27  ;;  %v624_v29 = vmul.f32 %v480_v21, %v336_v18  ;;  %v368_v32 = vld [vmem:[%s3647_s1 + $0x3f8] sm:$0xff]  ;;  %v511_v36 = vld [vmem:[#allocation2 + $0x3f0] sm:$0xff]  ;;  %2293 = vmatpush3.bf16.msra.mxu0 %v2292_v5  ;;  %v370_v21 = vld [vmem:[%s3647_s1 + $0x408] sm:$0xff] }
  0x9b   : > { %1094 = vmatprep.mubr.f32.mxu1 %v3265_v57  ;;  %v2324_v17 = vpack.c.bf16 %v638_v1, %v637_v0  ;;  %v3296_v39 = vld [vmem:[%s2936_s12 + $0x9a] sm:$0xff]  ;;  %v655_v41 = vmul.f32 %v511_v36, %v367_v30  ;;  %v319_v45 = vld [vmem:[%s3647_s1 + $0x270] sm:$0xff] }
  0x9c   : > { %950 = vmatmul.mubr.f32.gmra.mrb[24].mxu0 %v3201_v44  ;;  %v512_v40 = vld [vmem:[#allocation2 + $0x3f8] sm:$0xff]  ;;  %v2294_v49 = vpack.c.bf16 %v624_v29, %v623_v25  ;;  %v463_v52 = vld [vmem:[#allocation2 + $0x270] sm:$0xff]  ;;  %v3315_v0 = vld [vmem:[%s2936_s12 + $0xc0] sm:$0xff] }
  0x9d   : > { %2325 = vmatpush3.bf16.msra.mxu1 %v2324_v17  ;;  %v320_v46 = vld [vmem:[%s3647_s1 + $0x278] sm:$0xff]  ;;  %954 = vmatprep.mubr.f32.mxu0 %v3273_v6  ;;  %v656_v50 = vmul.f32 %v512_v40, %v368_v32  ;;  %v351_v54 = vld [vmem:[%s3647_s1 + $0x370] sm:$0xff]  ;;  %v607_v56 = vmul.f32 %v463_v52, %v319_v45  ;;  %v513_v25 = vld [vmem:[#allocation2 + $0x400] sm:$0xff] }
  0x9e   : > { %1095 = vmatmul.mubr.f32.gmra.mrb[24].mxu1 %v3269_v63  ;;  %v464_v53 = vld [vmem:[#allocation2 + $0x278] sm:$0xff]  ;;  %v495_v60 = vld [vmem:[#allocation2 + $0x370] sm:$0xff]  ;;  %2295 = vmatprep.subr.bf16.mxu0 %v2294_v49  ;;  %v514_v32 = vld [vmem:[#allocation2 + $0x408] sm:$0xff]  ;;  %v657_v36 = vmul.f32 %v513_v25, %v369_v19 }
  0x9f   : > { %1099 = vmatprep.mubr.f32.mxu1 %v3276_v11  ;;  %v608_v58 = vmul.f32 %v464_v53, %v320_v46  ;;  %v352_v59 = vld [vmem:[%s3647_s1 + $0x378] sm:$0xff]  ;;  %v2326_v1 = vpack.c.bf16 %v656_v50, %v655_v41  ;;  %v639_v5 = vmul.f32 %v495_v60, %v351_v54  ;;  %v3319_v17 = vld [vmem:[%s2936_s12 + $0xaa] sm:$0xff]  ;;  %v658_v41 = vmul.f32 %v514_v32, %v370_v21  ;;  %v517_v60 = vld [vmem:[#allocation2 + $0x420] sm:$0xff] }
  0xa0   : > { %v496_v61 = vld [vmem:[#allocation2 + $0x378] sm:$0xff]  ;;  %955 = vmatmul.mubr.f32.gmra.mrb[26].mxu0 %v3227_v16  ;;  %v371_v40 = vld [vmem:[%s3647_s1 + $0x410] sm:$0xff]  ;;  %v3340_v50 = vld [vmem:[%s2936_s12 + $0xc8] sm:$0xff] }
  0xa1   : > { %v640_v12 = vmul.f32 %v496_v61, %v352_v59  ;;  %959 = vmatprep.mubr.f32.mxu0 %v3287_v22  ;;  %v2296_v18 = vpack.c.bf16 %v608_v58, %v607_v56  ;;  %2327 = vmatprep.subr.bf16.mxu1 %v2326_v1  ;;  %v3329_v30 = vld [vmem:[%s2936_s12 + $0xb1] sm:$0xff]  ;;  %v2330_v52 = vpack.c.bf16 %v658_v41, %v657_v36  ;;  %v373_v58 = vld [vmem:[%s3647_s1 + $0x420] sm:$0xff]  ;;  %v374_v59 = vld [vmem:[%s3647_s1 + $0x428] sm:$0xff] }
  0xa2   : > { %1100 = vmatmul.mubr.f32.gmra.mrb[26].mxu1 %v3296_v39  ;;  %v372_v45 = vld [vmem:[%s3647_s1 + $0x418] sm:$0xff]  ;;  %v515_v46 = vld [vmem:[#allocation2 + $0x410] sm:$0xff]  ;;  %v518_v61 = vld [vmem:[#allocation2 + $0x428] sm:$0xff] }
  0xa3   : > { %v2328_v29 = vpack.c.bf16 %v640_v12, %v639_v5  ;;  %1104 = vmatprep.mubr.f32.mxu1 %v3315_v0  ;;  %2297 = vmatpush3.bf16.msra.mxu0 %v2296_v18  ;;  %v516_v49 = vld [vmem:[#allocation2 + $0x418] sm:$0xff]  ;;  %v659_v54 = vmul.f32 %v515_v46, %v371_v40  ;;  %v661_v5 = vmul.f32 %v517_v60, %v373_v58  ;;  %v375_v18 = vld [vmem:[%s3647_s1 + $0x430] sm:$0xff]  ;;  %v377_v36 = vld [vmem:[%s3647_s1 + $0x440] sm:$0xff] }
  0xa4   : > { %960 = vmatmul.mubr.f32.gmra.mrb[28].mxu0 %v3265_v57  ;;  %v3345_v53 = vld [vmem:[%s2936_s12 + $0xb2] sm:$0xff]  ;;  %v660_v56 = vmul.f32 %v516_v49, %v372_v45  ;;  %2331 = vmatprep.subr.bf16.mxu0 %v2330_v52  ;;  %v662_v12 = vmul.f32 %v518_v61, %v374_v59  ;;  %v521_v40 = vld [vmem:[#allocation2 + $0x440] sm:$0xff]  ;;  %v522_v41 = vld [vmem:[#allocation2 + $0x448] sm:$0xff] }
  0xa5   : > { %2329 = vmatpush3.bf16.msra.mxu1 %v2328_v29  ;;  %964 = vmatprep.mubr.f32.mxu0 %v3329_v30  ;;  %v376_v19 = vld [vmem:[%s3647_s1 + $0x438] sm:$0xff]  ;;  %v519_v21 = vld [vmem:[#allocation2 + $0x430] sm:$0xff]  ;;  %v381_v58 = vld [vmem:[%s3647_s1 + $0x460] sm:$0xff] }
  0xa6   : > { %1105 = vmatmul.mubr.f32.gmra.mrb[28].mxu1 %v3319_v17  ;;  %2362 = vmatprep.subr.bf16.mxu1 %v2330_v52  ;;  %v2334_v1 = vpack.c.bf16 %v660_v56, %v659_v54  ;;  %v520_v25 = vld [vmem:[#allocation2 + $0x438] sm:$0xff]  ;;  %v663_v29 = vmul.f32 %v519_v21, %v375_v18  ;;  %v379_v46 = vld [vmem:[%s3647_s1 + $0x450] sm:$0xff]  ;;  %v525_v59 = vld [vmem:[#allocation2 + $0x460] sm:$0xff] }
  0xa7   : > { %1109 = vmatprep.mubr.f32.mxu1 %v3340_v50  ;;  %v664_v32 = vmul.f32 %v520_v25, %v376_v19  ;;  %v523_v49 = vld [vmem:[#allocation2 + $0x450] sm:$0xff]  ;;  %v526_v60 = vld [vmem:[#allocation2 + $0x468] sm:$0xff]  ;;  %v669_v61 = vmul.f32 %v525_v59, %v381_v58  ;;  %v528_v18 = vld [vmem:[#allocation2 + $0x478] sm:$0xff] }
  0xa8   : > { %965 = vmatmul.mubr.f32.gmra.mrb[30].mxu0 %v3276_v11  ;;  %v667_v54 = vmul.f32 %v523_v49, %v379_v46 }
  0xa9   : > { %1179 = vmatprep.mubr.f32.mxu0 %v3008_v15  ;;  %v2338_v15 = vpack.c.bf16 %v662_v12, %v661_v5  ;;  %v383_v5 = vld [vmem:[%s3647_s1 + $0x470] sm:$0xff] }
  0xaa   : > { %1110 = vmatmul.mubr.f32.gmra.mrb[30].mxu1 %v3345_v53  ;;  %v527_v12 = vld [vmem:[#allocation2 + $0x470] sm:$0xff] }
  0xab   : > { %1324 = vmatprep.mubr.f32.mxu1 %v3035_v38  ;;  %v671_v19 = vmul.f32 %v527_v12, %v383_v5 }
  0xac   : > { %1180 = vmatmul.mubr.f32.vlgmr.msra.gmra.mrb[32].mxu0 %v2988_v3  ;;  %v378_v3 = vld [vmem:[%s3647_s1 + $0x448] sm:$0xff] }
  0xad   : > { %2333 = vmatpush3.bf16.msra.mxu0 %v2330_v52  ;;  %1184 = vmatprep.mubr.f32.mxu0 %v3032_v37  ;;  %v665_v37 = vmul.f32 %v521_v40, %v377_v36  ;;  %v666_v45 = vmul.f32 %v522_v41, %v378_v3 }
  0xae   : > { %1325 = vmatmul.mubr.f32.vlgmr.msra.gmra.mrb[32].mxu1 %v2991_v4  ;;  %2335 = vmatprep.subr.bf16.mxu0 %v2334_v1  ;;  %v2342_v4 = vpack.c.bf16 %v664_v32, %v663_v29 }
  0xaf   : > { %2370 = vmatpush3.bf16.msra.mxu1 %v2330_v52  ;;  %1329 = vmatprep.mubr.f32.mxu1 %v3074_v2  ;;  %v524_v52 = vld [vmem:[#allocation2 + $0x458] sm:$0xff] }
  0xb0   : > { %1185 = vmatmul.mubr.f32.gmra.mrb[34].mxu0 %v3025_v34  ;;  %2363 = vmatprep.subr.bf16.mxu1 %v2334_v1  ;;  %v380_v34 = vld [vmem:[%s3647_s1 + $0x458] sm:$0xff] }
  0xb1   : > { %1189 = vmatprep.mubr.f32.mxu0 %v3071_v62  ;;  %2337 = vmatpush3.bf16.msra.mxu0 %v2334_v1  ;;  %v668_v56 = vmul.f32 %v524_v52, %v380_v34 }
  0xb2   : > { %1330 = vmatmul.mubr.f32.gmra.mrb[34].mxu1 %v3028_v35  ;;  %2339 = vmatprep.subr.bf16.mxu0 %v2338_v15  ;;  %v2346_v35 = vpack.c.bf16 %v666_v45, %v665_v37 }
  0xb3   : > { %1334 = vmatprep.mubr.f32.mxu1 %v3085_v9  ;;  %2371 = vmatpush3.bf16.msra.mxu1 %v2334_v1 }
  0xb4   : > { %1190 = vmatmul.mubr.f32.gmra.mrb[36].mxu0 %v3035_v38  ;;  %2364 = vmatprep.subr.bf16.mxu1 %v2338_v15  ;;  %v382_v38 = vld [vmem:[%s3647_s1 + $0x468] sm:$0xff] }
  0xb5   : > { %1194 = vmatprep.mubr.f32.mxu0 %v3082_v8  ;;  %2341 = vmatpush3.bf16.msra.mxu0 %v2338_v15  ;;  %v670_v1 = vmul.f32 %v526_v60, %v382_v38 }
  0xb6   : > { %1335 = vmatmul.mubr.f32.gmra.mrb[36].mxu1 %v3039_v31  ;;  %2343 = vmatprep.subr.bf16.mxu0 %v2342_v4  ;;  %v2350_v31 = vpack.c.bf16 %v668_v56, %v667_v54 }
  0xb7   : > { %1339 = vmatprep.mubr.f32.mxu1 %v3120_v42  ;;  %2372 = vmatpush3.bf16.msra.mxu1 %v2338_v15 }
  0xb8   : > { %1195 = vmatmul.mubr.f32.gmra.mrb[38].mxu0 %v3074_v2  ;;  %2365 = vmatprep.subr.bf16.mxu1 %v2342_v4  ;;  %v384_v2 = vld [vmem:[%s3647_s1 + $0x478] sm:$0xff] }
  0xb9   : > { %1199 = vmatprep.mubr.f32.mxu0 %v3124_v43  ;;  %2345 = vmatpush3.bf16.msra.mxu0 %v2342_v4  ;;  %v672_v21 = vmul.f32 %v528_v18, %v384_v2 }
  0xba   : > { %1340 = vmatmul.mubr.f32.gmra.mrb[38].mxu1 %v3078_v7  ;;  %2347 = vmatprep.subr.bf16.mxu0 %v2346_v35  ;;  %v2354_v7 = vpack.c.bf16 %v670_v1, %v669_v61 }
  0xbb   : > { %1344 = vmatprep.mubr.f32.mxu1 %v3131_v48  ;;  %2373 = vmatpush3.bf16.msra.mxu1 %v2342_v4 }
  0xbc   : > { %1200 = vmatmul.mubr.f32.gmra.mrb[40].mxu0 %v3085_v9  ;;  %2366 = vmatprep.subr.bf16.mxu1 %v2346_v35  ;;  %v2358_v9 = vpack.c.bf16 %v672_v21, %v671_v19 }
  0xbd   : > { %1204 = vmatprep.mubr.f32.mxu0 %v3138_v51  ;;  %2349 = vmatpush3.bf16.msra.mxu0 %v2346_v35 }
  0xbe   : > { %1345 = vmatmul.mubr.f32.gmra.mrb[40].mxu1 %v3095_v13  ;;  %2351 = vmatprep.subr.bf16.mxu0 %v2350_v31  ;;  %v1765_v13 = vld [vmem:[%s2936_s12 + $0xc1] sm:$0xff] }
  0xbf   : > { %1349 = vmatprep.mubr.f32.mxu1 %v3170_v23  ;;  %2374 = vmatpush3.bf16.msra.mxu1 %v2346_v35 }
  0xc0   : > { %1205 = vmatmul.mubr.f32.gmra.mrb[42].mxu0 %v3120_v42  ;;  %2367 = vmatprep.subr.bf16.mxu1 %v2350_v31  ;;  %v1766_v42 = vld [vmem:[%s2936_s12 + $0xc9] sm:$0xff] }
  0xc1   : > { %1209 = vmatprep.mubr.f32.mxu0 %v3174_v24  ;;  %2353 = vmatpush3.bf16.msra.mxu0 %v2350_v31 }
  0xc2   : > { %1350 = vmatmul.mubr.f32.gmra.mrb[42].mxu1 %v3128_v47  ;;  %2355 = vmatprep.subr.bf16.mxu0 %v2354_v7  ;;  %v1735_v47 = vld [vmem:[%s2936_s12 + $0xc2] sm:$0xff] }
  0xc3   : > { %1354 = vmatprep.mubr.f32.mxu1 %v3181_v28  ;;  %2375 = vmatpush3.bf16.msra.mxu1 %v2350_v31 }
  0xc4   : > { %1210 = vmatmul.mubr.f32.gmra.mrb[44].mxu0 %v3131_v48  ;;  %2368 = vmatprep.subr.bf16.mxu1 %v2354_v7  ;;  %v1767_v48 = vld [vmem:[%s2936_s12 + $0xd9] sm:$0xff] }
  0xc5   : > { %1214 = vmatprep.mubr.f32.mxu0 %v3191_v33  ;;  %2357 = vmatpush3.bf16.msra.mxu0 %v2354_v7 }
  0xc6   : > { %1355 = vmatmul.mubr.f32.gmra.mrb[44].mxu1 %v3145_v55  ;;  %2359 = vmatprep.subr.bf16.mxu0 %v2358_v9  ;;  %v1736_v55 = vld [vmem:[%s2936_s12 + $0xca] sm:$0xff] }
  0xc7   : > { %1359 = vmatprep.mubr.f32.mxu1 %v3223_v14  ;;  %2376 = vmatpush3.bf16.msra.mxu1 %v2354_v7 }
  0xc8   : > { %1215 = vmatmul.mubr.f32.gmra.mrb[46].mxu0 %v3170_v23  ;;  %2369 = vmatprep.subr.bf16.mxu1 %v2358_v9  ;;  %v1751_v23 = vld [vmem:[%s2936_s12 + $0xd8] sm:$0xff] }
  0xc9   : > { %1219 = vmatprep.mubr.f32.mxu0 %v3220_v10  ;;  %2361 = vmatpush3.bf16.msra.mxu0 %v2358_v9 }
  0xca   : > { %1360 = vmatmul.mubr.f32.gmra.mrb[46].mxu1 %v3177_v26  ;;  %v1768_v26 = vld [vmem:[%s2936_s12 + $0xe1] sm:$0xff] }
  0xcb   : > { %1364 = vmatprep.mubr.f32.mxu1 %v3237_v20  ;;  %2377 = vmatpush3.bf16.msra.mxu1 %v2358_v9 }
  0xcc   : > { %1220 = vmatmul.mubr.f32.gmra.mrb[48].mxu0 %v3181_v28  ;;  %v1752_v28 = vld [vmem:[%s2936_s12 + $0xe0] sm:$0xff] }
  0xcd   : > { %1224 = vmatprep.mubr.f32.mxu0 %v3244_v27 }
  0xce   : > { %1365 = vmatmul.mubr.f32.gmra.mrb[48].mxu1 %v3201_v44 }
  0xcf   : > { %1369 = vmatprep.mubr.f32.mxu1 %v3273_v6 }
  0xd0   : > { %1225 = vmatmul.mubr.f32.gmra.mrb[50].mxu0 %v3223_v14 }
  0xd1   : > { %1229 = vmatprep.mubr.f32.mxu0 %v3269_v63 }
  0xd2   : > { %1370 = vmatmul.mubr.f32.gmra.mrb[50].mxu1 %v3227_v16 }
  0xd3   : > { %1374 = vmatprep.mubr.f32.mxu1 %v3287_v22 }
  0xd4   : > { %1230 = vmatmul.mubr.f32.gmra.mrb[52].mxu0 %v3237_v20 }
  0xd5   : > { %1234 = vmatprep.mubr.f32.mxu0 %v3296_v39 }
  0xd6   : > { %1375 = vmatmul.mubr.f32.gmra.mrb[52].mxu1 %v3265_v57 }
  0xd7   : > { %1379 = vmatprep.mubr.f32.mxu1 %v3329_v30 }
  0xd8   : > { %1235 = vmatmul.mubr.f32.gmra.mrb[54].mxu0 %v3273_v6 }
  0xd9   : > { %1239 = vmatprep.mubr.f32.mxu0 %v3319_v17 }
  0xda   : > { %1380 = vmatmul.mubr.f32.gmra.mrb[54].mxu1 %v3276_v11 }
  0xdb   : > { %1384 = vmatprep.mubr.f32.mxu1 %v1765_v13 }
  0xdc   : > { %1240 = vmatmul.mubr.f32.gmra.mrb[56].mxu0 %v3287_v22 }
  0xdd   : > { %1244 = vmatprep.mubr.f32.mxu0 %v3345_v53 }
  0xde   : > { %1385 = vmatmul.mubr.f32.gmra.mrb[56].mxu1 %v3315_v0 }
  0xdf   : > { %1389 = vmatprep.mubr.f32.mxu1 %v1766_v42 }
  0xe0   : > { %1245 = vmatmul.mubr.f32.gmra.mrb[58].mxu0 %v3329_v30 }
  0xe1   : > { %1249 = vmatprep.mubr.f32.mxu0 %v1735_v47 }
  0xe2   : > { %1390 = vmatmul.mubr.f32.gmra.mrb[58].mxu1 %v3340_v50 }
  0xe3   : > { %1394 = vmatprep.mubr.f32.mxu1 %v1767_v48 }
  0xe4   : > { %1250 = vmatmul.mubr.f32.gmra.mrb[60].mxu0 %v1765_v13 }
  0xe5   : > { %1254 = vmatprep.mubr.f32.mxu0 %v1736_v55 }
  0xe6   : > { %1395 = vmatmul.mubr.f32.gmra.mrb[60].mxu1 %v1751_v23 }
  0xe7   : > { %1399 = vmatprep.mubr.f32.mxu1 %v1768_v26 }
  0xe8   : > { %1255 = vmatmul.mubr.f32.gmra.mrb[62].mxu0 %v1766_v42 }
  0xe9   : > { %2178 = vmatprep.mubr.f32.mxu0 %v3071_v62  ;;  %v1783_v62 = vld [vmem:[%s2936_s12 + $0xda] sm:$0xff] }
  0xea   : > { %1400 = vmatmul.mubr.f32.gmra.mrb[62].mxu1 %v1752_v28 }
  0xeb   : > { %2190 = vmatprep.mubr.f32.mxu1 %v3269_v63 }
  0xec   : > { %2179 = vmatmul.mubr.f32.vlgmr.msra.gmra.mrb[64].mxu0 %v3082_v8  ;;  %v1784_v8 = vld [vmem:[%s2936_s12 + $0xe2] sm:$0xff]  ;;  %s227_s12 = sand.u32 1, %s2568_s16  }
  0xed   : > { %2181 = vmatprep.mubr.f32.mxu0 %v3124_v43  ;;  %s1687_s6 = sshll.u32 %s227_s12, 7  ;;  %s3594_s14 = scalar_lea.sflag [#allocation4], %s227_s12 }
  0xee   : > { %2191 = vmatmul.mubr.f32.vlgmr.msra.gmra.mrb[64].mxu1 %v3296_v39  ;;  %s3556_s8 = scalar_lea.vmem [#allocation5], %s1687_s6  ;;  %s2500_s6 = scalar_lea.vmem %s2499_s7, 4096 }
  0xef   : > { %2193 = vmatprep.mubr.f32.mxu1 %v3319_v17  ;;  %s1583_s19 = sshll.u32 %s3556_s8, 4  ;;  %s3587_s19 = int_to_ptr.vmem [resolvable:$true] %s1583_s19 }
  0xf0   : > { %2182 = vmatmul.mubr.f32.gmra.mrb[66].mxu0 %v3138_v51  ;;  %v3465_v51 = vld [vmem:[%s3649_s3] ss:$0 sm:$0xff]  ;;  %s2494_s23 = scalar_lea.vmem %s3587_s19, 2048  ;;  %p2501_p5 = scmp.lt.s32.totalorder %s3587_s19, %s2499_s7 }
  0xf1   : > { %2184 = vmatprep.mubr.f32.mxu0 %v3174_v24  ;;  %p2495_p10 = scmp.ne.s32.totalorder %s3587_s19, %s2494_s23  ;;  %p2502_p6 = scmp.lt.s32.totalorder %s2500_s6, %s2494_s23 }
  0xf2   : > { %2194 = vmatmul.mubr.f32.gmra.mrb[66].mxu1 %v3345_v53 }
  0xf3   : > { %2196 = vmatprep.mubr.f32.mxu1 %v1735_v47  ;;  %p2496_p0 = pnand %p2495_p10, %p3662_p12  ;;  %p2503_p7 = por %p2502_p6, %p2501_p5 }
  0xf4   : > { %2185 = vmatmul.mubr.f32.gmra.mrb[68].mxu0 %v3191_v33 }
  0xf5   : > { %2187 = vmatprep.mubr.f32.mxu0 %v3220_v10  ;;  %p2497_p2 = pneg %p2496_p0 }
  0xf6   : > { %2197 = vmatmul.mubr.f32.gmra.mrb[68].mxu1 %v1736_v55 }
  0xf7   : > { %2199 = vmatprep.mubr.f32.mxu1 %v1783_v62  ;;  %p2504_p9 = pnand %p2503_p7, %p2497_p2 }
  0xf8   : > { %2188 = vmatmul.mubr.f32.gmra.mrb[70].mxu0 %v3244_v27 }
  0xfa   : > { %2200 = vmatmul.mubr.f32.gmra.mrb[70].mxu1 %v1784_v8 }
 0x13e   : > { %v1826_v43 = vpop.f32.mrb[0].mxu0 }
 0x13f   : > { %v1827_v24 = vpop.f32.mrb[1].mxu0 }
 0x140   : > { %v1906_v44 = vpop.f32.mrb[0].mxu1  ;;  %v1828_v14 = vadd.f32 %v1827_v24, %v1826_v43 }
 0x141   : > { %v1907_v16 = vpop.f32.mrb[1].mxu1 }
 0x142   : > { %v1908_v33 = vadd.f32 %v1907_v16, %v1906_v44  ;;  %v892_v20 = vadd.f32 %v1828_v14, %v3465_v51 }
 0x143   : > { %v1829_v10 = vpop.f32.mrb[2].mxu0 }
 0x144   : > { %v1830_v57 = vpop.f32.mrb[3].mxu0  ;;  %v3468_v63 = vadd.f32 %v1908_v33, %v892_v20 }
 0x145   : > { %v1909_v6 = vpop.f32.mrb[2].mxu1  ;;  %v1831_v27 = vadd.f32 %v1830_v57, %v1829_v10 }
 0x146   : > { %v1910_v11 = vpop.f32.mrb[3].mxu1 }
 0x147   : > { %v897_v22 = vadd.f32 %v1831_v27, %v3465_v51  ;;  %v1911_v39 = vadd.f32 %v1910_v11, %v1909_v6  ;;  %v1832_v0 = vpop.f32.mrb[4].mxu0 }
 0x148   : > { %v1833_v17 = vpop.f32.mrb[5].mxu0 }
 0x149   : > { %v3471_v30 = vadd.f32 %v1911_v39, %v897_v22  ;;  %v1912_v50 = vpop.f32.mrb[4].mxu1  ;;  %v1834_v53 = vadd.f32 %v1833_v17, %v1832_v0 }
 0x14a   : > { %v1913_v25 = vpop.f32.mrb[5].mxu1 }
 0x14b   : > { %v902_v15 = vadd.f32 %v1834_v53, %v3465_v51  ;;  %v1914_v29 = vadd.f32 %v1913_v25, %v1912_v50  ;;  %v1835_v32 = vpop.f32.mrb[6].mxu0 }
 0x14c   : > { %v1836_v36 = vpop.f32.mrb[7].mxu0 }
 0x14d   : > { %v3474_v3 = vadd.f32 %v1914_v29, %v902_v15  ;;  %v1915_v40 = vpop.f32.mrb[6].mxu1  ;;  %v1837_v41 = vadd.f32 %v1836_v36, %v1835_v32 }
 0x14e   : > { %v1916_v4 = vpop.f32.mrb[7].mxu1 }
 0x14f   : > { %v907_v37 = vadd.f32 %v1837_v41, %v3465_v51  ;;  %v1917_v45 = vadd.f32 %v1916_v4, %v1915_v40  ;;  %v1838_v46 = vpop.f32.mrb[8].mxu0 }
 0x150   : > { %v1839_v34 = vpop.f32.mrb[9].mxu0 }
 0x151   : > { %v3477_v49 = vadd.f32 %v1917_v45, %v907_v37  ;;  %v1918_v52 = vpop.f32.mrb[8].mxu1  ;;  %v1840_v35 = vadd.f32 %v1839_v34, %v1838_v46 }
 0x152   : > { %v1919_v54 = vpop.f32.mrb[9].mxu1 }
 0x153   : > { %v912_v56 = vadd.f32 %v1840_v35, %v3465_v51  ;;  %v1920_v58 = vadd.f32 %v1919_v54, %v1918_v52  ;;  %v1841_v38 = vpop.f32.mrb[10].mxu0 }
 0x154   : > { %v1842_v59 = vpop.f32.mrb[11].mxu0 }
 0x155   : > { %v3480_v60 = vadd.f32 %v1920_v58, %v912_v56  ;;  %v1921_v31 = vpop.f32.mrb[10].mxu1  ;;  %v1843_v61 = vadd.f32 %v1842_v59, %v1841_v38 }
 0x156   : > { %v1922_v1 = vpop.f32.mrb[11].mxu1 }
 0x157   : > { %v917_v5 = vadd.f32 %v1843_v61, %v3465_v51  ;;  %v1923_v2 = vadd.f32 %v1922_v1, %v1921_v31  ;;  %v1844_v12 = vpop.f32.mrb[12].mxu0 }
 0x158   : > { %v1845_v18 = vpop.f32.mrb[13].mxu0 }
 0x159   : > { %v3483_v7 = vadd.f32 %v1923_v2, %v917_v5  ;;  %v1924_v19 = vpop.f32.mrb[12].mxu1  ;;  %v1846_v21 = vadd.f32 %v1845_v18, %v1844_v12 }
 0x15a   : > { %v1925_v9 = vpop.f32.mrb[13].mxu1 }
 0x15b   : > { %v922_v13 = vadd.f32 %v1846_v21, %v3465_v51  ;;  %v1926_v42 = vadd.f32 %v1925_v9, %v1924_v19  ;;  %v1847_v47 = vpop.f32.mrb[14].mxu0 }
 0x15c   : > { %v1848_v48 = vpop.f32.mrb[15].mxu0 }
 0x15d   : > { %v3486_v55 = vadd.f32 %v1926_v42, %v922_v13  ;;  %v1927_v23 = vpop.f32.mrb[14].mxu1  ;;  %v1849_v26 = vadd.f32 %v1848_v48, %v1847_v47 }
 0x15e   : > { %v1928_v28 = vpop.f32.mrb[15].mxu1 }
 0x15f   : > { %v927_v62 = vadd.f32 %v1849_v26, %v3465_v51  ;;  %v1929_v8 = vadd.f32 %v1928_v28, %v1927_v23  ;;  %v1850_v43 = vpop.f32.mrb[16].mxu0 }
 0x160   : > { %v1851_v44 = vpop.f32.mrb[17].mxu0 }
 0x161   : > { %v3489_v24 = vadd.f32 %v1929_v8, %v927_v62  ;;  %v1930_v14 = vpop.f32.mrb[16].mxu1  ;;  %v1852_v16 = vadd.f32 %v1851_v44, %v1850_v43 }
 0x162   : > { %v1931_v33 = vpop.f32.mrb[17].mxu1 }
 0x163   : > { %v932_v20 = vadd.f32 %v1852_v16, %v3465_v51  ;;  %v1932_v10 = vadd.f32 %v1931_v33, %v1930_v14  ;;  %v1853_v57 = vpop.f32.mrb[18].mxu0 }
 0x164   : > { %v1854_v6 = vpop.f32.mrb[19].mxu0 }
 0x165   : > { %v3492_v27 = vadd.f32 %v1932_v10, %v932_v20  ;;  %v1933_v11 = vpop.f32.mrb[18].mxu1  ;;  %v1855_v22 = vadd.f32 %v1854_v6, %v1853_v57 }
 0x166   : > { %v1934_v39 = vpop.f32.mrb[19].mxu1 }
 0x167   : > { %v937_v0 = vadd.f32 %v1855_v22, %v3465_v51  ;;  %v1935_v17 = vadd.f32 %v1934_v39, %v1933_v11  ;;  %v1856_v50 = vpop.f32.mrb[20].mxu0 }
 0x168   : > { %v1857_v53 = vpop.f32.mrb[21].mxu0 }
 0x169   : > { %v3495_v25 = vadd.f32 %v1935_v17, %v937_v0  ;;  %v1936_v15 = vpop.f32.mrb[20].mxu1  ;;  %v1858_v29 = vadd.f32 %v1857_v53, %v1856_v50 }
 0x16a   : > { %v1937_v32 = vpop.f32.mrb[21].mxu1 }
 0x16b   : > { %v942_v36 = vadd.f32 %v1858_v29, %v3465_v51  ;;  %v1938_v40 = vadd.f32 %v1937_v32, %v1936_v15  ;;  %v1859_v41 = vpop.f32.mrb[22].mxu0 }
 0x16c   : > { %v1860_v4 = vpop.f32.mrb[23].mxu0 }
 0x16d   : > { %v3498_v37 = vadd.f32 %v1938_v40, %v942_v36  ;;  %v1939_v45 = vpop.f32.mrb[22].mxu1  ;;  %v1861_v46 = vadd.f32 %v1860_v4, %v1859_v41 }
 0x16e   : > { %v1940_v34 = vpop.f32.mrb[23].mxu1 }
 0x16f   : > { %v947_v52 = vadd.f32 %v1861_v46, %v3465_v51  ;;  %v1941_v35 = vadd.f32 %v1940_v34, %v1939_v45  ;;  %v1862_v54 = vpop.f32.mrb[24].mxu0 }
 0x170   : > { %v1863_v56 = vpop.f32.mrb[25].mxu0 }
 0x171   : > { %v3501_v58 = vadd.f32 %v1941_v35, %v947_v52  ;;  %v1942_v38 = vpop.f32.mrb[24].mxu1  ;;  %v1864_v59 = vadd.f32 %v1863_v56, %v1862_v54 }
 0x172   : > { %v1943_v31 = vpop.f32.mrb[25].mxu1 }
 0x173   : > { %v952_v61 = vadd.f32 %v1864_v59, %v3465_v51  ;;  %v1944_v1 = vadd.f32 %v1943_v31, %v1942_v38  ;;  %v1865_v5 = vpop.f32.mrb[26].mxu0 }
 0x174   : > { %v1866_v2 = vpop.f32.mrb[27].mxu0 }
 0x175   : > { %v3504_v12 = vadd.f32 %v1944_v1, %v952_v61  ;;  %v1945_v18 = vpop.f32.mrb[26].mxu1  ;;  %v1867_v19 = vadd.f32 %v1866_v2, %v1865_v5 }
 0x176   : > { %v1946_v21 = vpop.f32.mrb[27].mxu1 }
 0x177   : > { %v957_v9 = vadd.f32 %v1867_v19, %v3465_v51  ;;  %v1947_v13 = vadd.f32 %v1946_v21, %v1945_v18  ;;  %v1868_v42 = vpop.f32.mrb[28].mxu0 }
 0x178   : > { %v1869_v47 = vpop.f32.mrb[29].mxu0 }
 0x179   : > { %v3507_v48 = vadd.f32 %v1947_v13, %v957_v9  ;;  %v1948_v23 = vpop.f32.mrb[28].mxu1  ;;  %v1870_v26 = vadd.f32 %v1869_v47, %v1868_v42 }
 0x17a   : > { %v1949_v28 = vpop.f32.mrb[29].mxu1 }
 0x17b   : > { %v962_v62 = vadd.f32 %v1870_v26, %v3465_v51  ;;  %v1950_v8 = vadd.f32 %v1949_v28, %v1948_v23  ;;  %v1871_v43 = vpop.f32.mrb[30].mxu0 }
 0x17c   : > { %v1872_v44 = vpop.f32.mrb[31].mxu0 }
 0x17d   : > { %v3510_v14 = vadd.f32 %v1950_v8, %v962_v62  ;;  %v1951_v16 = vpop.f32.mrb[30].mxu1  ;;  %v1873_v33 = vadd.f32 %v1872_v44, %v1871_v43 }
 0x17e   : > { %v1952_v20 = vpop.f32.mrb[31].mxu1 }
 0x17f   : > { %v967_v10 = vadd.f32 %v1873_v33, %v3465_v51  ;;  %v1953_v57 = vadd.f32 %v1952_v20, %v1951_v16  ;;  %v1986_v6 = vpop.f32.mrb[32].mxu0 }
 0x180   : > { %v1987_v11 = vpop.f32.mrb[33].mxu0 }
 0x181   : > { %v3513_v22 = vadd.f32 %v1953_v57, %v967_v10  ;;  %v2066_v39 = vpop.f32.mrb[32].mxu1  ;;  %v1988_v0 = vadd.f32 %v1987_v11, %v1986_v6 }
 0x182   : > { %v2067_v17 = vpop.f32.mrb[33].mxu1 }
 0x183   : > { %v1182_v50 = vadd.f32 %v1988_v0, %v3468_v63  ;;  %v2068_v53 = vadd.f32 %v2067_v17, %v2066_v39  ;;  %v1989_v15 = vpop.f32.mrb[34].mxu0 }
 0x184   : > { %v1990_v29 = vpop.f32.mrb[35].mxu0 }
 0x185   : > { %v2069_v32 = vpop.f32.mrb[34].mxu1  ;;  %v1991_v36 = vadd.f32 %v1990_v29, %v1989_v15  ;;  %v3516_v40 = vadd.f32 %v2068_v53, %v1182_v50 }
 0x186   : > { %v2070_v41 = vpop.f32.mrb[35].mxu1 }
 0x187   : > { %v1187_v51 = vadd.f32 %v1991_v36, %v3471_v30  ;;  %v2071_v4 = vadd.f32 %v2070_v41, %v2069_v32  ;;  %v1992_v45 = vpop.f32.mrb[36].mxu0 }
 0x188   : > { %v1993_v46 = vpop.f32.mrb[37].mxu0 }
 0x189   : > { %v2072_v34 = vpop.f32.mrb[36].mxu1  ;;  %v1994_v52 = vadd.f32 %v1993_v46, %v1992_v45  ;;  %v3519_v35 = vadd.f32 %v2071_v4, %v1187_v51 }
 0x18a   : > { %v2073_v54 = vpop.f32.mrb[37].mxu1 }
 0x18b   : > { %v1192_v63 = vadd.f32 %v1994_v52, %v3474_v3  ;;  %v2074_v56 = vadd.f32 %v2073_v54, %v2072_v34  ;;  %v1995_v38 = vpop.f32.mrb[38].mxu0 }
 0x18c   : > { %v1996_v59 = vpop.f32.mrb[39].mxu0 }
 0x18d   : > { %v2075_v31 = vpop.f32.mrb[38].mxu1  ;;  %v1997_v61 = vadd.f32 %v1996_v59, %v1995_v38  ;;  %v3522_v1 = vadd.f32 %v2074_v56, %v1192_v63 }
 0x18e   : > { %v2076_v5 = vpop.f32.mrb[39].mxu1 }
 0x18f   : > { %v1197_v30 = vadd.f32 %v1997_v61, %v3477_v49  ;;  %v2077_v2 = vadd.f32 %v2076_v5, %v2075_v31  ;;  %v1998_v18 = vpop.f32.mrb[40].mxu0 }
 0x190   : > { %v1999_v19 = vpop.f32.mrb[41].mxu0 }
 0x191   : > { %v2078_v21 = vpop.f32.mrb[40].mxu1  ;;  %v2000_v9 = vadd.f32 %v1999_v19, %v1998_v18  ;;  %v3525_v13 = vadd.f32 %v2077_v2, %v1197_v30 }
 0x192   : > { %v2079_v42 = vpop.f32.mrb[41].mxu1 }
 0x193   : > { %v1202_v3 = vadd.f32 %v2000_v9, %v3480_v60  ;;  %v2080_v47 = vadd.f32 %v2079_v42, %v2078_v21  ;;  %v2001_v23 = vpop.f32.mrb[42].mxu0 }
 0x194   : > { %v2002_v26 = vpop.f32.mrb[43].mxu0 }
 0x195   : > { %v2081_v28 = vpop.f32.mrb[42].mxu1  ;;  %v2003_v62 = vadd.f32 %v2002_v26, %v2001_v23  ;;  %v3528_v8 = vadd.f32 %v2080_v47, %v1202_v3 }
 0x196   : > { %v2082_v43 = vpop.f32.mrb[43].mxu1 }
 0x197   : > { %v1207_v49 = vadd.f32 %v2003_v62, %v3483_v7  ;;  %v2083_v44 = vadd.f32 %v2082_v43, %v2081_v28  ;;  %v2004_v16 = vpop.f32.mrb[44].mxu0 }
 0x198   : > { %v2005_v33 = vpop.f32.mrb[45].mxu0 }
 0x199   : > { %v2084_v20 = vpop.f32.mrb[44].mxu1  ;;  %v2006_v10 = vadd.f32 %v2005_v33, %v2004_v16  ;;  %v3531_v57 = vadd.f32 %v2083_v44, %v1207_v49 }
 0x19a   : > { %v2085_v6 = vpop.f32.mrb[45].mxu1 }
 0x19b   : > { %v1212_v60 = vadd.f32 %v2006_v10, %v3486_v55  ;;  %v2086_v11 = vadd.f32 %v2085_v6, %v2084_v20  ;;  %v2007_v39 = vpop.f32.mrb[46].mxu0 }
 0x19c   : > { %v2008_v0 = vpop.f32.mrb[47].mxu0 }
 0x19d   : > { %v2087_v17 = vpop.f32.mrb[46].mxu1  ;;  %v2009_v50 = vadd.f32 %v2008_v0, %v2007_v39  ;;  %v3534_v53 = vadd.f32 %v2086_v11, %v1212_v60 }
 0x19e   : > { %v2088_v15 = vpop.f32.mrb[47].mxu1 }
 0x19f   : > { %v1217_v7 = vadd.f32 %v2009_v50, %v3489_v24  ;;  %v2089_v29 = vadd.f32 %v2088_v15, %v2087_v17  ;;  %v2010_v32 = vpop.f32.mrb[48].mxu0 }
 0x1a0   : > { %v2011_v36 = vpop.f32.mrb[49].mxu0 }
 0x1a1   : > { %v2090_v41 = vpop.f32.mrb[48].mxu1  ;;  %v2012_v51 = vadd.f32 %v2011_v36, %v2010_v32  ;;  %v3537_v4 = vadd.f32 %v2089_v29, %v1217_v7 }
 0x1a2   : > { %v2091_v45 = vpop.f32.mrb[49].mxu1 }
 0x1a3   : > { %v1222_v55 = vadd.f32 %v2012_v51, %v3492_v27  ;;  %v2092_v46 = vadd.f32 %v2091_v45, %v2090_v41  ;;  %v2013_v34 = vpop.f32.mrb[50].mxu0 }
 0x1a4   : > { %v2014_v52 = vpop.f32.mrb[51].mxu0 }
 0x1a5   : > { %v2093_v54 = vpop.f32.mrb[50].mxu1  ;;  %v2015_v63 = vadd.f32 %v2014_v52, %v2013_v34  ;;  %v3540_v56 = vadd.f32 %v2092_v46, %v1222_v55 }
 0x1a6   : > { %v2094_v38 = vpop.f32.mrb[51].mxu1 }
 0x1a7   : > { %v1227_v24 = vadd.f32 %v2015_v63, %v3495_v25  ;;  %v2095_v59 = vadd.f32 %v2094_v38, %v2093_v54  ;;  %v2016_v31 = vpop.f32.mrb[52].mxu0 }
 0x1a8   : > { %v2017_v61 = vpop.f32.mrb[53].mxu0 }
 0x1a9   : > { %v2096_v5 = vpop.f32.mrb[52].mxu1  ;;  %v2018_v30 = vadd.f32 %v2017_v61, %v2016_v31  ;;  %v1372_v2 = vadd.f32 %v2095_v59, %v1227_v24 }
 0x1aa   : > { %v2097_v18 = vpop.f32.mrb[53].mxu1 }
 0x1ab   : > { %v1232_v19 = vadd.f32 %v2018_v30, %v3498_v37  ;;  %v2098_v27 = vadd.f32 %v2097_v18, %v2096_v5  ;;  %v2019_v21 = vpop.f32.mrb[54].mxu0 }
 0x1ac   : > { %v2020_v9 = vpop.f32.mrb[55].mxu0 }
 0x1ad   : > { %v2099_v42 = vpop.f32.mrb[54].mxu1  ;;  %v2021_v3 = vadd.f32 %v2020_v9, %v2019_v21  ;;  %v3544_v47 = vadd.f32 %v2098_v27, %v1232_v19 }
 0x1ae   : > { %v2100_v23 = vpop.f32.mrb[55].mxu1 }
 0x1af   : > { %v1237_v26 = vadd.f32 %v2021_v3, %v3501_v58  ;;  %v2101_v25 = vadd.f32 %v2100_v23, %v2099_v42  ;;  %v2022_v28 = vpop.f32.mrb[56].mxu0 }
 0x1b0   : > { %v2023_v62 = vpop.f32.mrb[57].mxu0 }
 0x1b1   : > { %v2102_v43 = vpop.f32.mrb[56].mxu1  ;;  %v2024_v49 = vadd.f32 %v2023_v62, %v2022_v28  ;;  %v1382_v44 = vadd.f32 %v2101_v25, %v1237_v26 }
 0x1b2   : > { %v2103_v16 = vpop.f32.mrb[57].mxu1 }
 0x1b3   : > { %v1242_v37 = vadd.f32 %v2024_v49, %v3504_v12  ;;  %v2104_v33 = vadd.f32 %v2103_v16, %v2102_v43  ;;  %v2025_v20 = vpop.f32.mrb[58].mxu0 }
 0x1b4   : > { %v2026_v10 = vpop.f32.mrb[59].mxu0 }
 0x1b5   : > { %v2105_v6 = vpop.f32.mrb[58].mxu1  ;;  %v2027_v60 = vadd.f32 %v2026_v10, %v2025_v20  ;;  %v1387_v11 = vadd.f32 %v2104_v33, %v1242_v37 }
 0x1b6   : > { %v2106_v39 = vpop.f32.mrb[59].mxu1 }
 0x1b7   : > { %v1247_v58 = vadd.f32 %v2027_v60, %v3507_v48  ;;  %v2107_v0 = vadd.f32 %v2106_v39, %v2105_v6  ;;  %v2028_v17 = vpop.f32.mrb[60].mxu0 }
 0x1b8   : > { %v2029_v50 = vpop.f32.mrb[61].mxu0 }
 0x1b9   : > { %v2108_v15 = vpop.f32.mrb[60].mxu1  ;;  %v2030_v7 = vadd.f32 %v2029_v50, %v2028_v17  ;;  %v1392_v29 = vadd.f32 %v2107_v0, %v1247_v58 }
 0x1ba   : > { %v2109_v32 = vpop.f32.mrb[61].mxu1 }
 0x1bb   : > { %v1252_v12 = vadd.f32 %v2030_v7, %v3510_v14  ;;  %v2110_v36 = vadd.f32 %v2109_v32, %v2108_v15  ;;  %v2031_v41 = vpop.f32.mrb[62].mxu0 }
 0x1bc   : > { %v2032_v51 = vpop.f32.mrb[63].mxu0 }
 0x1bd   : > { %v2111_v45 = vpop.f32.mrb[62].mxu1  ;;  %v2033_v55 = vadd.f32 %v2032_v51, %v2031_v41  ;;  %v1397_v46 = vadd.f32 %v2110_v36, %v1252_v12 }
 0x1be   : > { %v2112_v34 = vpop.f32.mrb[63].mxu1 }
 0x1bf   : > { %v1257_v48 = vadd.f32 %v2033_v55, %v3513_v22  ;;  %v2113_v52 = vadd.f32 %v2112_v34, %v2111_v45  ;;  %v2180_v54 = vpop.f32.mrb[64].mxu0 }
 0x1c0   : > { %v1477_v63 = vadd.f32 %v2180_v54, %v3519_v35  ;;  %v1471_v38 = vpop.f32.mrb[65].mxu0 }
 0x1c1   : > { %v2192_v24 = vpop.f32.mrb[64].mxu1  ;;  %v1472_v14 = vadd.f32 %v1471_v38, %v3516_v40  ;;  %v1402_v59 = vadd.f32 %v2113_v52, %v1257_v48 }
 0x1c2   : > { %1551 = vst [vmem:[%s3556_s8 + $0x8] sm:$0xff] %v1477_v63  ;;  %v1517_v22 = vadd.f32 %v2192_v24, %v1372_v2  ;;  %v1511_v31 = vpop.f32.mrb[65].mxu1 }
 0x1c3   : > { %1550 = vst [vmem:[%s3556_s8] sm:$0xff] %v1472_v14  ;;  %v1512_v35 = vadd.f32 %v1511_v31, %v3540_v56  ;;  %v2183_v61 = vpop.f32.mrb[66].mxu0 }
 0x1c4   : > { %1559 = vst [vmem:[%s3556_s8 + $0x48] sm:$0xff] %v1517_v22  ;;  %v1487_v40 = vadd.f32 %v2183_v61, %v3525_v13  ;;  %v1481_v5 = vpop.f32.mrb[67].mxu0 }
 0x1c5   : > { %1558 = vst [vmem:[%s3556_s8 + $0x40] sm:$0xff] %v1512_v35  ;;  %v2195_v30 = vpop.f32.mrb[66].mxu1  ;;  %v1482_v18 = vadd.f32 %v1481_v5, %v3522_v1 }
 0x1c6   : > { %1553 = vst [vmem:[%s3556_s8 + $0x18] sm:$0xff] %v1487_v40  ;;  %v1527_v2 = vadd.f32 %v2195_v30, %v1382_v44  ;;  %v1521_v19 = vpop.f32.mrb[67].mxu1 }
 0x1c7   : > { %1552 = vst [vmem:[%s3556_s8 + $0x10] sm:$0xff] %v1482_v18  ;;  %v1522_v56 = vadd.f32 %v1521_v19, %v3544_v47  ;;  %v2186_v27 = vpop.f32.mrb[68].mxu0 }
 0x1c8   : > { %1561 = vst [vmem:[%s3556_s8 + $0x58] sm:$0xff] %v1527_v2  ;;  %v1497_v13 = vadd.f32 %v2186_v27, %v3531_v57  ;;  %v1491_v21 = vpop.f32.mrb[69].mxu0 }
 0x1c9   : > { %1560 = vst [vmem:[%s3556_s8 + $0x50] sm:$0xff] %v1522_v56  ;;  %v2198_v1 = vpop.f32.mrb[68].mxu1  ;;  %v1492_v9 = vadd.f32 %v1491_v21, %v3528_v8 }
 0x1ca   : > { %1555 = vst [vmem:[%s3556_s8 + $0x28] sm:$0xff] %v1497_v13  ;;  %v1537_v42 = vadd.f32 %v2198_v1, %v1392_v29  ;;  %v1531_v3 = vpop.f32.mrb[69].mxu1 }
 0x1cb   : > { %1554 = vst [vmem:[%s3556_s8 + $0x20] sm:$0xff] %v1492_v9  ;;  %v1532_v47 = vadd.f32 %v1531_v3, %v1387_v11  ;;  %v2189_v23 = vpop.f32.mrb[70].mxu0 }
 0x1cc   : > { %1563 = vst [vmem:[%s3556_s8 + $0x68] sm:$0xff] %v1537_v42  ;;  %v1507_v57 = vadd.f32 %v2189_v23, %v3537_v4  ;;  %v1501_v26 = vpop.f32.mrb[71].mxu0 }
 0x1cd   : > { %1562 = vst [vmem:[%s3556_s8 + $0x60] sm:$0xff] %v1532_v47  ;;  %v2201_v25 = vpop.f32.mrb[70].mxu1  ;;  %v1502_v8 = vadd.f32 %v1501_v26, %v3534_v53 }
 0x1ce   : > { %1557 = vst [vmem:[%s3556_s8 + $0x38] sm:$0xff] %v1507_v57  ;;  %v1547_v28 = vadd.f32 %v2201_v25, %v1402_v59  ;;  %v1541_v62 = vpop.f32.mrb[71].mxu1 }
 0x1cf   : > { %1556 = vst [vmem:[%s3556_s8 + $0x30] sm:$0xff] %v1502_v8  ;;  %v1542_v4 = vadd.f32 %v1541_v62, %v1397_v46 }
 0x1d0   : > { %1565 = vst [vmem:[%s3556_s8 + $0x78] sm:$0xff] %v1547_v28 }
 0x1d1   : > { %1564 = vst [vmem:[%s3556_s8 + $0x70] sm:$0xff] %v1542_v4 }
 0x1d2   : > { %2507 = shalt.err (!%p2504_p9)
}
 0x1d3   : > { %s2508_s12 = scalar_lea.hbm %s3585_s28, 2048  ;;  %s2512_s13 = scalar_lea.hbm %s3650_s4, 8192 }
 0x1d4   : > { %p2509_p11 = scmp.ne.s32.totalorder %s3585_s28, %s2508_s12  ;;  %p2513_p4 = scmp.lt.u32.totalorder %s3585_s28, %s3650_s4 }
 0x1d5   : > { %p2514_p3 = scmp.lt.u32.totalorder %s2512_s13, %s2508_s12  ;;  %p2516_p10 = scmp.lt.u32.totalorder %s2508_s12, %s3585_s28 }
 0x1d6   : > { %p2510_p13 = pnand %p2509_p11, %p3662_p12 }
 0x1d7   : > { %p2515_p8 = por %p2514_p3, %p2513_p4 }
 0x1d8   : > { %p2511_p1 = pneg %p2510_p13 }
 0x1d9   : > { %p2517_p0 = por %p2516_p10, %p2515_p8 }
 0x1db   : > { %p2518_p2 = pnand %p2517_p0, %p2511_p1 }
 0x1dd   : > { %2521 = shalt.err (!%p2518_p2)
}
 0x1de   : > { %s2598_s24 = smov 128   ;;  %s2599_s10 = smov 8  }
 0x1df   : > { %2384 = dma.vmem_to_hbm [thread:$0]  (%p3662_p12), %s3587_s19, 2048, %s3585_s28, %s3594_s14, %s2598_s24, %s2598_s24, %s2599_s10  }
 0x1e0 PF: > { %p2396_p5 = scmp.ge.s32.totalorder %s2592_s22, 2  ;;  %s1598_s23 = sand.u32 1, %s2564_s15  }
 0x1e1   : > { %p3663_p6 = scmp.ne.s32.totalorder %s3656_s30, 0  ;;  %s1599_s27 = scalar_lea.sflag [#allocation4], %s1598_s23 }
 0x1e3   : > { %p2391_p7 = pnand %p2396_p5, %p3663_p6 }
 0x1e5   : > { %2559 = dma.done.wait (!%p2391_p7), %s1599_s27, 2048  }
 0x1e6   : > { %2561 = vsyncadd (!%p2391_p7), %s1599_s27, 4294965248  ;;  %s18_s22 = sadd.s32 1, %s2592_s22   ;;  %s3664_s15 = smov %s2568_s16 }
 0x1e7   : > { %p15_p9 = scmp.ge.s32.totalorder %s18_s22, 6   ;;  %s3665_s16 = smov %s2572_s17 }
 0x1e8   : > { %s3666_s17 = smov %s2704_s9  ;;  %s3667_s18 = smov %s2584_s20 }
 0x1e9   : > { %s3668_s19 = smov %s2588_s21  ;;  %s3669_s20 = smov %s3672_s25 }
 0x1ea   : > { %s3670_s21 = smov %s3676_s26  ;;  %17 = sbr.rel (!%p15_p9) target bundleno = 6 (0x6), region = 78 }
 0x1f1   :  { %1604 = vsyncpa [#allocation3], 1 }
 0x1f2   :  { %1606 = vsyncpa [#allocation3 + $0x1], 1 }
 0x1f3   :  { %1607 = vsyncpa [#allocation4], 1 }
 0x1f4   :  { %1609 = vsyncpa [#allocation4 + $0x1], 1 }

</bundles_post_ra>
